<compile_context>
chip_gen: v7x
topology: tpu7x:2x2x1
jax: 0.10.0
libtpu: 0.0.40
codegen_flags: <defaults>
</compile_context>

<pallas_src>
import math
import jax
import jax.numpy as jnp
from jax.experimental import pallas as pl
from jax.experimental.pallas import tpu as pltpu

# ----------------------- configuration (mirrors __init__) -------------------
IN_CHANNELS = 2            # data is [B, 2, N] (real/imag channels)
STRIDE      = 1            # TODO(synk): only stride=1 supported (ConvT folding + fused-lane layout)
KERNEL_SZS  = [3, 3, 3]
HIDDEN_DIMS = [8, 16, 16]
LATENT_DIM  = 8
INPUT_SIZE  = 16
BATCH       = 2
PAD         = 1
BN_EPS      = 1e-5
NUM_LAYERS  = len(HIDDEN_DIMS)

assert STRIDE == 1
# length-preserving convs are required for the fused-lane layout used here
assert all(k == 2 * PAD + 1 for k in KERNEL_SZS)

# sizes derived exactly like the PyTorch constructor
_tmp = INPUT_SIZE
for _ks in KERNEL_SZS:
    _tmp = int(math.floor((_tmp + 2 * PAD - _ks) / STRIDE + 1))
PRE_LATENT = _tmp
PRE_OUT = PRE_LATENT
for _ks in reversed(KERNEL_SZS):
    PRE_OUT = (PRE_OUT - 1) * STRIDE - 2 * PAD + _ks
assert PRE_LATENT == INPUT_SIZE and PRE_OUT == INPUT_SIZE

_HID_REV = list(reversed(HIDDEN_DIMS))
_KS_REV  = list(reversed(KERNEL_SZS))

ENC_CIN  = [HIDDEN_DIMS[0]] + HIDDEN_DIMS[:-1]     # [8, 8, 16]
ENC_COUT = list(HIDDEN_DIMS)                       # [8, 16, 16]
DEC_CIN  = list(_HID_REV)                          # [16, 16, 8]
DEC_COUT = _HID_REV[1:] + [3]                      # [16, 8, 3]

LP  = INPUT_SIZE + 2 * PAD      # per-sample padded length (18)
BLP = BATCH * LP                # fused, padded lane width of every activation (36)
N_OUT_COLS = 3 * INPUT_SIZE + 3 * LATENT_DIM       # 48 + 24 = 72

# ----------------------- packed parameter buffer layout ---------------------
W_PACK = 256                    # lane width of the packed parameter buffer

_PARAM_LAYOUT = {}
_next_row = 0


def _align8(x):
    return (x + 7) // 8 * 8


def _reserve(name, nrows, ncols):
    global _next_row
    assert ncols <= W_PACK
    _PARAM_LAYOUT[name] = (_next_row, nrows, ncols)
    _next_row = _align8(_next_row + nrows)


_reserve('mask', 1, BLP)                                   # validity mask (constant)
_reserve('embed', HIDDEN_DIMS[0], IN_CHANNELS + 1)         # [w0|w1|bias]
for _i in range(NUM_LAYERS):
    _reserve(f'enc{_i}', ENC_COUT[_i], KERNEL_SZS[_i] * ENC_CIN[_i] + 3)
_reserve('fc', HIDDEN_DIMS[-1] * PRE_LATENT + 1, 2 * LATENT_DIM)
_reserve('dec_in', LATENT_DIM + 1, _HID_REV[0] * PRE_LATENT)
for _i in range(NUM_LAYERS):
    _reserve(f'dec{_i}', DEC_COUT[_i], _KS_REV[_i] * DEC_CIN[_i] + 3)
_reserve('final', 3 * PRE_OUT + 1, 3 * INPUT_SIZE)
PACK_ROWS = _align8(_next_row)                             # 424


# --------------------------------- kernel -----------------------------------
def vae_circcov_fwd_kernel(data_ref, eps_ref, p_ref, out_ref):
    f32 = jnp.float32

    def blk(name):
        r0, nr, nc = _PARAM_LAYOUT[name]
        return p_ref[r0:r0 + nr, 0:nc]

    mask = blk('mask')                 # [1, BLP]; 1.0 at valid (interior) lanes
    xp = data_ref[...]                 # [Cin, BLP] fused, zero-padded input
    eps = eps_ref[...]                 # [B, latent]

    def shift(x, d):
        # y[:, p] = x[:, p - d]  (zero fill, no wraparound)
        if d == 0:
            return x
        z = jnp.zeros((x.shape[0], abs(d)), f32)
        if d > 0:
            return jnp.concatenate([z, x[:, :-d]], axis=1)
        return jnp.concatenate([x[:, -d:], z], axis=1)

    def conv_bn_act(x, name, cin, cout, K):
        # one im2col matmul per layer; bias folded in via the mask row
        prm = blk(name)                                    # [cout, K*cin + 3]
        w = prm[:, :K * cin + 1]                           # weights | bias col
        gamma = prm[:, K * cin + 1:K * cin + 2]            # [cout, 1]
        beta = prm[:, K * cin + 2:K * cin + 3]
        rhs = jnp.concatenate(
            [shift(x, PAD - k) for k in range(K)] + [mask], axis=0)
        y = jnp.dot(w, rhs, preferred_element_type=f32)    # [cout, BLP] conv+bias
        # training-mode BatchNorm1d (biased var over batch*length), one pass
        n = float(BATCH * INPUT_SIZE)
        ym = y * mask
        s1 = jnp.sum(ym, axis=1, keepdims=True)
        s2 = jnp.sum(ym * y, axis=1, keepdims=True)
        mean = s1 / n
        var = s2 / n - mean * mean
        inv = jax.lax.rsqrt(var + BN_EPS) * gamma
        # ReLU, then re-zero pad columns for the next layer's convolution
        return jnp.maximum((y - mean) * inv + beta, 0.0) * mask

    # ------------------------------ encode ----------------------------------
    # embed_data: Conv1d(in_channels -> hidden[0], k=1) on the VPU (2 FMAs)
    emb = blk('embed')                                     # [h0, Cin + 1]
    h = emb[:, IN_CHANNELS:IN_CHANNELS + 1] * mask         # bias (zero at pads)
    for i in range(IN_CHANNELS):
        h = h + emb[:, i:i + 1] * xp[i:i + 1, :]

    for i in range(NUM_LAYERS):
        h = conv_bn_act(h, f'enc{i}', ENC_CIN[i], ENC_COUT[i], KERNEL_SZS[i])

    # flatten(start_dim=1) in PyTorch c-major order, then fc_mu_var in 1 matmul
    c_enc = HIDDEN_DIMS[-1]
    flat_rows = []
    for b in range(BATCH):
        base = b * LP + PAD
        parts = [h[c:c + 1, base:base + INPUT_SIZE] for c in range(c_enc)]
        flat_rows.append(jnp.concatenate(parts, axis=1))   # [1, C*L]
    flat = jnp.concatenate(flat_rows, axis=0)              # [B, C*L]

    fcb = blk('fc')                                        # [C*L + 1, 2*latent]
    nfc = c_enc * PRE_LATENT
    mulog = jnp.dot(flat, fcb[:nfc, :], preferred_element_type=f32) \
        + fcb[nfc:nfc + 1, :]
    mu_enc = mulog[:, :LATENT_DIM]
    log_std = mulog[:, LATENT_DIM:]

    # --------------------------- reparameterize -----------------------------
    z0 = eps * jnp.exp(log_std) + mu_enc                   # [B, latent]

    # ------------------------------ decode ----------------------------------
    dib = blk('dec_in')                                    # [latent + 1, C*L]
    c_dec = _HID_REV[0]
    D = jnp.dot(z0, dib[:LATENT_DIM, :], preferred_element_type=f32) \
        + dib[LATENT_DIM:LATENT_DIM + 1, :]                # [B, C*L]

    # un-flatten into the fused, zero-padded [C, B*LP] layout
    zc = jnp.zeros((c_dec, PAD), f32)
    pieces = []
    for b in range(BATCH):
        rows = [D[b:b + 1, c * PRE_LATENT:(c + 1) * PRE_LATENT]
                for c in range(c_dec)]
        pieces += [zc, jnp.concatenate(rows, axis=0), zc]
    d = jnp.concatenate(pieces, axis=1)                    # [C, BLP]

    for i in range(NUM_LAYERS):
        # ConvTranspose1d(stride=1) folded to Conv1d (flipped kernel) in init
        d = conv_bn_act(d, f'dec{i}', DEC_CIN[i], DEC_COUT[i], _KS_REV[i])

    # final_layer on flatten(decoder output) in 1 matmul
    flat2_rows = []
    for b in range(BATCH):
        base = b * LP + PAD
        parts = [d[c:c + 1, base:base + PRE_OUT] for c in range(3)]
        flat2_rows.append(jnp.concatenate(parts, axis=1))  # [1, 3*pre_out]
    flat2 = jnp.concatenate(flat2_rows, axis=0)            # [B, 3*pre_out]

    fin = blk('final')                                     # [3*pre_out + 1, 3*N]
    nfin = 3 * PRE_OUT
    out = jnp.dot(flat2, fin[:nfin, :], preferred_element_type=f32) \
        + fin[nfin:nfin + 1, :]                            # [B, 3*N]

    # single lane-contiguous packed output: mu_re|mu_im|log_prec|mu_enc|log_std|z0
    out_ref[...] = jnp.concatenate([out, mu_enc, log_std, z0], axis=1)


# ------------------------- parameters (deterministic) -----------------------
def init_params(key):
    """weights_init: every weight & bias ~ N(0, 0.05); packed into one
    [PACK_ROWS, W_PACK] f32 buffer in the layout the kernel expects."""
    keys = iter(jax.random.split(key, 64))

    def nrm(shape):
        return 0.05 * jax.random.normal(next(keys), shape, dtype=jnp.float32)

    entries = []

    # validity mask (constant, not learned): 1.0 at interior lanes of each sample
    pos = jnp.arange(BLP) % LP
    mask = ((pos >= PAD) & (pos < PAD + INPUT_SIZE)).astype(jnp.float32)[None, :]
    entries.append(('mask', mask))

    # embed_data: Conv1d(in_channels, hidden[0], kernel_size=1)
    w = nrm((HIDDEN_DIMS[0], IN_CHANNELS, 1))
    b = nrm((HIDDEN_DIMS[0],))
    entries.append(('embed', jnp.concatenate([w[:, :, 0], b[:, None]], axis=1)))

    # encoder: Conv1d + BatchNorm1d per layer
    for i in range(NUM_LAYERS):
        cin, cout, K = ENC_CIN[i], ENC_COUT[i], KERNEL_SZS[i]
        w = nrm((cout, cin, K))                              # PyTorch (Cout,Cin,K)
        b, g, be = nrm((cout,)), nrm((cout,)), nrm((cout,))
        wflat = jnp.transpose(w, (0, 2, 1)).reshape(cout, K * cin)   # [o, k*cin+i]
        entries.append((f'enc{i}', jnp.concatenate(
            [wflat, b[:, None], g[:, None], be[:, None]], axis=1)))

    # fc_mu_var: Linear(pre_latent*hidden[-1], 2*latent)
    w = nrm((2 * LATENT_DIM, HIDDEN_DIMS[-1] * PRE_LATENT))
    b = nrm((2 * LATENT_DIM,))
    entries.append(('fc', jnp.concatenate([w.T, b[None, :]], axis=0)))

    # decoder_input: Linear(latent, hidden_rev[0]*pre_latent)
    w = nrm((_HID_REV[0] * PRE_LATENT, LATENT_DIM))
    b = nrm((_HID_REV[0] * PRE_LATENT,))
    entries.append(('dec_in', jnp.concatenate([w.T, b[None, :]], axis=0)))

    # decoder: ConvTranspose1d + BatchNorm1d, folded into equivalent Conv1d
    for i in range(NUM_LAYERS):
        cin, cout, K = DEC_CIN[i], DEC_COUT[i], _KS_REV[i]
        wt = nrm((cin, cout, K))                             # PyTorch (Cin,Cout,K)
        b, g, be = nrm((cout,)), nrm((cout,)), nrm((cout,))
        wconv = jnp.transpose(wt[:, :, ::-1], (1, 0, 2))     # flip k, swap i/o
        wflat = jnp.transpose(wconv, (0, 2, 1)).reshape(cout, K * cin)
        entries.append((f'dec{i}', jnp.concatenate(
            [wflat, b[:, None], g[:, None], be[:, None]], axis=1)))

    # final_layer: Linear(3*pre_out, 3*input_size)
    w = nrm((3 * INPUT_SIZE, 3 * PRE_OUT))
    b = nrm((3 * INPUT_SIZE,))
    entries.append(('final', jnp.concatenate([w.T, b[None, :]], axis=0)))

    buf = jnp.zeros((PACK_ROWS, W_PACK), jnp.float32)
    for name, arr in entries:
        r0, nr, nc = _PARAM_LAYOUT[name]
        assert arr.shape == (nr, nc), (name, arr.shape, (nr, nc))
        buf = buf.at[r0:r0 + nr, 0:nc].set(arr)
    return buf


def dft_matrix(n):
    # The reference's dft_matrix is external; assume the unitary DFT.
    k = jnp.arange(n)
    return (jnp.exp(-2j * jnp.pi * k[:, None] * k[None, :] / n)
            / jnp.sqrt(float(n))).astype(jnp.complex64)


# ------------------------------ forward wrapper ------------------------------
def vae_circcov_forward(packed_params, data, *, train=True, rng=None):
    B = data.shape[0]
    assert B == BATCH
    if train:
        eps = jax.random.normal(rng, (B, LATENT_DIM), dtype=jnp.float32)
    else:
        eps = jnp.zeros((B, LATENT_DIM), dtype=jnp.float32)

    # pack input into the fused, zero-padded [Cin, B*(N+2*PAD)] lane layout
    xp = jnp.zeros((IN_CHANNELS, B * LP), jnp.float32)
    for b in range(B):
        xp = xp.at[:, b * LP + PAD:b * LP + PAD + INPUT_SIZE].set(data[b])

    packed_out = pl.pallas_call(
        vae_circcov_fwd_kernel,
        out_shape=jax.ShapeDtypeStruct((B, N_OUT_COLS), jnp.float32),
        in_specs=[pl.BlockSpec(memory_space=pltpu.MemorySpace.VMEM)] * 3,
        out_specs=pl.BlockSpec(memory_space=pltpu.MemorySpace.VMEM),
    )(xp, eps, packed_params)

    N = INPUT_SIZE
    mu_re = packed_out[:, 0:N]
    mu_im = packed_out[:, N:2 * N]
    log_prec = packed_out[:, 2 * N:3 * N]
    mu_enc = packed_out[:, 3 * N:3 * N + LATENT_DIM]
    log_std_enc = packed_out[:, 3 * N + LATENT_DIM:3 * N + 2 * LATENT_DIM]
    z0 = packed_out[:, 3 * N + 2 * LATENT_DIM:3 * N + 3 * LATENT_DIM]

    mu_out = mu_re + 1j * mu_im
    z, jacobians = z0, 0
    if not train:
        # eval-mode complex covariance (complex64 unsupported in Pallas TPU -> JAX glue)
        F = dft_matrix(INPUT_SIZE)
        c = jnp.exp(-log_prec).astype(jnp.complex64)
        C = jnp.einsum('ji,bj,jk->bik', F.conj(), c, F)     # F^H diag(c) F
        mu = mu_out @ F.conj()
    else:
        C, mu = None, None
    # TODO(synk): BatchNorm uses training-mode batch statistics (fresh nn.Module);
    # running-stat eval BN is not modeled.
    return [mu_out, data, log_prec, mu_enc, log_std_enc, z0, z, jacobians, mu, C]


# ----------------------------------- main ------------------------------------
if __name__ == "__main__":
    root = jax.random.PRNGKey(0)
    k_params, k_data, k_eps = jax.random.split(root, 3)

    params = init_params(k_params)
    data = jax.random.normal(k_data, (BATCH, IN_CHANNELS, INPUT_SIZE),
                             dtype=jnp.float32)

    outs = vae_circcov_forward(params, data, train=True, rng=k_eps)
    mu_out, data_out, log_prec, mu_enc, log_std_enc, z0, z, jac, mu, C = outs
    jax.block_until_ready((mu_out, log_prec, mu_enc, log_std_enc, z0))
    print("KERNEL_OK")
</pallas_src>

<mosaic_0001>
module attributes {stable_mosaic.version = 11 : i64} {
  func.func @vae_circcov_fwd_kernel(%arg0: memref<2x36xf32, #tpu.memory_space<vmem>>, %arg1: memref<2x8xf32, #tpu.memory_space<vmem>>, %arg2: memref<424x256xf32, #tpu.memory_space<vmem>>, %arg3: memref<2x72xf32, #tpu.memory_space<vmem>>) attributes {dimension_semantics = [], scalar_prefetch = 0 : i64, scratch_operands = 0 : i64, tpu.core_type = #tpu.core_type<tc>} {
    %c0 = arith.constant 0 : index
    %c0_0 = arith.constant 0 : index
    %0 = vector.load %arg2[%c0, %c0_0] : memref<424x256xf32, #tpu.memory_space<vmem>>, vector<1x36xf32>
    %c0_1 = arith.constant 0 : index
    %c0_2 = arith.constant 0 : index
    %1 = vector.load %arg0[%c0_1, %c0_2] : memref<2x36xf32, #tpu.memory_space<vmem>>, vector<2x36xf32>
    %c0_3 = arith.constant 0 : index
    %c0_4 = arith.constant 0 : index
    %2 = vector.load %arg1[%c0_3, %c0_4] : memref<2x8xf32, #tpu.memory_space<vmem>>, vector<2x8xf32>
    %c8 = arith.constant 8 : index
    %c0_5 = arith.constant 0 : index
    %3 = vector.load %arg2[%c8, %c0_5] : memref<424x256xf32, #tpu.memory_space<vmem>>, vector<8x3xf32>
    %4 = vector.extract_strided_slice %3 {offsets = [0, 2], sizes = [8, 1], strides = [1, 1]} : vector<8x3xf32> to vector<8x1xf32>
    %5 = vector.broadcast %4 : vector<8x1xf32> to vector<8x36xf32>
    %6 = vector.broadcast %0 : vector<1x36xf32> to vector<8x36xf32>
    %7 = arith.mulf %5, %6 : vector<8x36xf32>
    %8 = vector.extract_strided_slice %3 {offsets = [0, 0], sizes = [8, 1], strides = [1, 1]} : vector<8x3xf32> to vector<8x1xf32>
    %9 = vector.extract_strided_slice %1 {offsets = [0, 0], sizes = [1, 36], strides = [1, 1]} : vector<2x36xf32> to vector<1x36xf32>
    %10 = vector.broadcast %8 : vector<8x1xf32> to vector<8x36xf32>
    %11 = vector.broadcast %9 : vector<1x36xf32> to vector<8x36xf32>
    %12 = arith.mulf %10, %11 : vector<8x36xf32>
    %13 = arith.addf %7, %12 : vector<8x36xf32>
    %14 = vector.extract_strided_slice %3 {offsets = [0, 1], sizes = [8, 1], strides = [1, 1]} : vector<8x3xf32> to vector<8x1xf32>
    %15 = vector.extract_strided_slice %1 {offsets = [1, 0], sizes = [1, 36], strides = [1, 1]} : vector<2x36xf32> to vector<1x36xf32>
    %16 = vector.broadcast %14 : vector<8x1xf32> to vector<8x36xf32>
    %17 = vector.broadcast %15 : vector<1x36xf32> to vector<8x36xf32>
    %18 = arith.mulf %16, %17 : vector<8x36xf32>
    %19 = arith.addf %13, %18 : vector<8x36xf32>
    %c16 = arith.constant 16 : index
    %c0_6 = arith.constant 0 : index
    %20 = vector.load %arg2[%c16, %c0_6] : memref<424x256xf32, #tpu.memory_space<vmem>>, vector<8x27xf32>
    %21 = vector.extract_strided_slice %20 {offsets = [0, 0], sizes = [8, 25], strides = [1, 1]} : vector<8x27xf32> to vector<8x25xf32>
    %22 = vector.extract_strided_slice %20 {offsets = [0, 25], sizes = [8, 1], strides = [1, 1]} : vector<8x27xf32> to vector<8x1xf32>
    %23 = vector.extract_strided_slice %20 {offsets = [0, 26], sizes = [8, 1], strides = [1, 1]} : vector<8x27xf32> to vector<8x1xf32>
    %cst = arith.constant 0.000000e+00 : f32
    %24 = vector.broadcast %cst : f32 to vector<8x1xf32>
    %25 = vector.extract_strided_slice %19 {offsets = [0, 0], sizes = [8, 35], strides = [1, 1]} : vector<8x36xf32> to vector<8x35xf32>
    %26 = tpu.concatenate %24, %25 in 1 : vector<8x1xf32>, vector<8x35xf32> -> vector<8x36xf32>
    %cst_7 = arith.constant 0.000000e+00 : f32
    %27 = vector.broadcast %cst_7 : f32 to vector<8x1xf32>
    %28 = vector.extract_strided_slice %19 {offsets = [0, 1], sizes = [8, 35], strides = [1, 1]} : vector<8x36xf32> to vector<8x35xf32>
    %29 = tpu.concatenate %28, %27 in 1 : vector<8x35xf32>, vector<8x1xf32> -> vector<8x36xf32>
    %30 = tpu.concatenate %26, %19, %29, %0 in 0 : vector<8x36xf32>, vector<8x36xf32>, vector<8x36xf32>, vector<1x36xf32> -> vector<25x36xf32>
    %cst_8 = arith.constant dense<0.000000e+00> : vector<8x36xf32>
    %31 = tpu.matmul %21, %30, %cst_8 {dimension_numbers = #tpu.dot_dimension_numbers<[1], [0], [0], [1], [0, 0, 1, 1], [], []>} : vector<8x25xf32>, vector<25x36xf32>, vector<8x36xf32> -> vector<8x36xf32>
    %32 = vector.broadcast %0 : vector<1x36xf32> to vector<8x36xf32>
    %33 = arith.mulf %31, %32 : vector<8x36xf32>
    %cst_9 = arith.constant dense<0.000000e+00> : vector<8xf32>
    %34 = vector.multi_reduction <add>, %33, %cst_9 [1] : vector<8x36xf32> to vector<8xf32>
    %35 = vector.shape_cast %34 : vector<8xf32> to vector<8x1xf32>
    %36 = arith.mulf %33, %31 : vector<8x36xf32>
    %cst_10 = arith.constant dense<0.000000e+00> : vector<8xf32>
    %37 = vector.multi_reduction <add>, %36, %cst_10 [1] : vector<8x36xf32> to vector<8xf32>
    %38 = vector.shape_cast %37 : vector<8xf32> to vector<8x1xf32>
    %cst_11 = arith.constant 3.200000e+01 : f32
    %39 = vector.broadcast %cst_11 : f32 to vector<8x1xf32>
    %40 = arith.divf %35, %39 : vector<8x1xf32>
    %cst_12 = arith.constant 3.200000e+01 : f32
    %41 = vector.broadcast %cst_12 : f32 to vector<8x1xf32>
    %42 = arith.divf %38, %41 : vector<8x1xf32>
    %43 = arith.mulf %40, %40 : vector<8x1xf32>
    %44 = arith.subf %42, %43 : vector<8x1xf32>
    %cst_13 = arith.constant 9.99999974E-6 : f32
    %45 = vector.broadcast %cst_13 : f32 to vector<8x1xf32>
    %46 = arith.addf %44, %45 : vector<8x1xf32>
    %47 = math.rsqrt %46 : vector<8x1xf32>
    %48 = arith.mulf %47, %22 : vector<8x1xf32>
    %49 = vector.broadcast %40 : vector<8x1xf32> to vector<8x36xf32>
    %50 = arith.subf %31, %49 : vector<8x36xf32>
    %51 = vector.broadcast %48 : vector<8x1xf32> to vector<8x36xf32>
    %52 = arith.mulf %50, %51 : vector<8x36xf32>
    %53 = vector.broadcast %23 : vector<8x1xf32> to vector<8x36xf32>
    %54 = arith.addf %52, %53 : vector<8x36xf32>
    %cst_14 = arith.constant 0.000000e+00 : f32
    %55 = vector.broadcast %cst_14 : f32 to vector<8x36xf32>
    %56 = arith.maximumf %54, %55 : vector<8x36xf32>
    %57 = vector.broadcast %0 : vector<1x36xf32> to vector<8x36xf32>
    %58 = arith.mulf %56, %57 : vector<8x36xf32>
    %c24 = arith.constant 24 : index
    %c0_15 = arith.constant 0 : index
    %59 = vector.load %arg2[%c24, %c0_15] : memref<424x256xf32, #tpu.memory_space<vmem>>, vector<16x27xf32>
    %60 = vector.extract_strided_slice %59 {offsets = [0, 0], sizes = [16, 25], strides = [1, 1]} : vector<16x27xf32> to vector<16x25xf32>
    %61 = vector.extract_strided_slice %59 {offsets = [0, 25], sizes = [16, 1], strides = [1, 1]} : vector<16x27xf32> to vector<16x1xf32>
    %62 = vector.extract_strided_slice %59 {offsets = [0, 26], sizes = [16, 1], strides = [1, 1]} : vector<16x27xf32> to vector<16x1xf32>
    %cst_16 = arith.constant 0.000000e+00 : f32
    %63 = vector.broadcast %cst_16 : f32 to vector<8x1xf32>
    %64 = vector.extract_strided_slice %58 {offsets = [0, 0], sizes = [8, 35], strides = [1, 1]} : vector<8x36xf32> to vector<8x35xf32>
    %65 = tpu.concatenate %63, %64 in 1 : vector<8x1xf32>, vector<8x35xf32> -> vector<8x36xf32>
    %cst_17 = arith.constant 0.000000e+00 : f32
    %66 = vector.broadcast %cst_17 : f32 to vector<8x1xf32>
    %67 = vector.extract_strided_slice %58 {offsets = [0, 1], sizes = [8, 35], strides = [1, 1]} : vector<8x36xf32> to vector<8x35xf32>
    %68 = tpu.concatenate %67, %66 in 1 : vector<8x35xf32>, vector<8x1xf32> -> vector<8x36xf32>
    %69 = tpu.concatenate %65, %58, %68, %0 in 0 : vector<8x36xf32>, vector<8x36xf32>, vector<8x36xf32>, vector<1x36xf32> -> vector<25x36xf32>
    %cst_18 = arith.constant dense<0.000000e+00> : vector<16x36xf32>
    %70 = tpu.matmul %60, %69, %cst_18 {dimension_numbers = #tpu.dot_dimension_numbers<[1], [0], [0], [1], [0, 0, 1, 1], [], []>} : vector<16x25xf32>, vector<25x36xf32>, vector<16x36xf32> -> vector<16x36xf32>
    %71 = vector.broadcast %0 : vector<1x36xf32> to vector<16x36xf32>
    %72 = arith.mulf %70, %71 : vector<16x36xf32>
    %cst_19 = arith.constant dense<0.000000e+00> : vector<16xf32>
    %73 = vector.multi_reduction <add>, %72, %cst_19 [1] : vector<16x36xf32> to vector<16xf32>
    %74 = vector.shape_cast %73 : vector<16xf32> to vector<16x1xf32>
    %75 = arith.mulf %72, %70 : vector<16x36xf32>
    %cst_20 = arith.constant dense<0.000000e+00> : vector<16xf32>
    %76 = vector.multi_reduction <add>, %75, %cst_20 [1] : vector<16x36xf32> to vector<16xf32>
    %77 = vector.shape_cast %76 : vector<16xf32> to vector<16x1xf32>
    %cst_21 = arith.constant 3.200000e+01 : f32
    %78 = vector.broadcast %cst_21 : f32 to vector<16x1xf32>
    %79 = arith.divf %74, %78 : vector<16x1xf32>
    %cst_22 = arith.constant 3.200000e+01 : f32
    %80 = vector.broadcast %cst_22 : f32 to vector<16x1xf32>
    %81 = arith.divf %77, %80 : vector<16x1xf32>
    %82 = arith.mulf %79, %79 : vector<16x1xf32>
    %83 = arith.subf %81, %82 : vector<16x1xf32>
    %cst_23 = arith.constant 9.99999974E-6 : f32
    %84 = vector.broadcast %cst_23 : f32 to vector<16x1xf32>
    %85 = arith.addf %83, %84 : vector<16x1xf32>
    %86 = math.rsqrt %85 : vector<16x1xf32>
    %87 = arith.mulf %86, %61 : vector<16x1xf32>
    %88 = vector.broadcast %79 : vector<16x1xf32> to vector<16x36xf32>
    %89 = arith.subf %70, %88 : vector<16x36xf32>
    %90 = vector.broadcast %87 : vector<16x1xf32> to vector<16x36xf32>
    %91 = arith.mulf %89, %90 : vector<16x36xf32>
    %92 = vector.broadcast %62 : vector<16x1xf32> to vector<16x36xf32>
    %93 = arith.addf %91, %92 : vector<16x36xf32>
    %cst_24 = arith.constant 0.000000e+00 : f32
    %94 = vector.broadcast %cst_24 : f32 to vector<16x36xf32>
    %95 = arith.maximumf %93, %94 : vector<16x36xf32>
    %96 = vector.broadcast %0 : vector<1x36xf32> to vector<16x36xf32>
    %97 = arith.mulf %95, %96 : vector<16x36xf32>
    %c40 = arith.constant 40 : index
    %c0_25 = arith.constant 0 : index
    %98 = vector.load %arg2[%c40, %c0_25] : memref<424x256xf32, #tpu.memory_space<vmem>>, vector<16x51xf32>
    %99 = vector.extract_strided_slice %98 {offsets = [0, 0], sizes = [16, 49], strides = [1, 1]} : vector<16x51xf32> to vector<16x49xf32>
    %100 = vector.extract_strided_slice %98 {offsets = [0, 49], sizes = [16, 1], strides = [1, 1]} : vector<16x51xf32> to vector<16x1xf32>
    %101 = vector.extract_strided_slice %98 {offsets = [0, 50], sizes = [16, 1], strides = [1, 1]} : vector<16x51xf32> to vector<16x1xf32>
    %cst_26 = arith.constant 0.000000e+00 : f32
    %102 = vector.broadcast %cst_26 : f32 to vector<16x1xf32>
    %103 = vector.extract_strided_slice %97 {offsets = [0, 0], sizes = [16, 35], strides = [1, 1]} : vector<16x36xf32> to vector<16x35xf32>
    %104 = tpu.concatenate %102, %103 in 1 : vector<16x1xf32>, vector<16x35xf32> -> vector<16x36xf32>
    %cst_27 = arith.constant 0.000000e+00 : f32
    %105 = vector.broadcast %cst_27 : f32 to vector<16x1xf32>
    %106 = vector.extract_strided_slice %97 {offsets = [0, 1], sizes = [16, 35], strides = [1, 1]} : vector<16x36xf32> to vector<16x35xf32>
    %107 = tpu.concatenate %106, %105 in 1 : vector<16x35xf32>, vector<16x1xf32> -> vector<16x36xf32>
    %108 = tpu.concatenate %104, %97, %107, %0 in 0 : vector<16x36xf32>, vector<16x36xf32>, vector<16x36xf32>, vector<1x36xf32> -> vector<49x36xf32>
    %cst_28 = arith.constant dense<0.000000e+00> : vector<16x36xf32>
    %109 = tpu.matmul %99, %108, %cst_28 {dimension_numbers = #tpu.dot_dimension_numbers<[1], [0], [0], [1], [0, 0, 1, 1], [], []>} : vector<16x49xf32>, vector<49x36xf32>, vector<16x36xf32> -> vector<16x36xf32>
    %110 = vector.broadcast %0 : vector<1x36xf32> to vector<16x36xf32>
    %111 = arith.mulf %109, %110 : vector<16x36xf32>
    %cst_29 = arith.constant dense<0.000000e+00> : vector<16xf32>
    %112 = vector.multi_reduction <add>, %111, %cst_29 [1] : vector<16x36xf32> to vector<16xf32>
    %113 = vector.shape_cast %112 : vector<16xf32> to vector<16x1xf32>
    %114 = arith.mulf %111, %109 : vector<16x36xf32>
    %cst_30 = arith.constant dense<0.000000e+00> : vector<16xf32>
    %115 = vector.multi_reduction <add>, %114, %cst_30 [1] : vector<16x36xf32> to vector<16xf32>
    %116 = vector.shape_cast %115 : vector<16xf32> to vector<16x1xf32>
    %cst_31 = arith.constant 3.200000e+01 : f32
    %117 = vector.broadcast %cst_31 : f32 to vector<16x1xf32>
    %118 = arith.divf %113, %117 : vector<16x1xf32>
    %cst_32 = arith.constant 3.200000e+01 : f32
    %119 = vector.broadcast %cst_32 : f32 to vector<16x1xf32>
    %120 = arith.divf %116, %119 : vector<16x1xf32>
    %121 = arith.mulf %118, %118 : vector<16x1xf32>
    %122 = arith.subf %120, %121 : vector<16x1xf32>
    %cst_33 = arith.constant 9.99999974E-6 : f32
    %123 = vector.broadcast %cst_33 : f32 to vector<16x1xf32>
    %124 = arith.addf %122, %123 : vector<16x1xf32>
    %125 = math.rsqrt %124 : vector<16x1xf32>
    %126 = arith.mulf %125, %100 : vector<16x1xf32>
    %127 = vector.broadcast %118 : vector<16x1xf32> to vector<16x36xf32>
    %128 = arith.subf %109, %127 : vector<16x36xf32>
    %129 = vector.broadcast %126 : vector<16x1xf32> to vector<16x36xf32>
    %130 = arith.mulf %128, %129 : vector<16x36xf32>
    %131 = vector.broadcast %101 : vector<16x1xf32> to vector<16x36xf32>
    %132 = arith.addf %130, %131 : vector<16x36xf32>
    %cst_34 = arith.constant 0.000000e+00 : f32
    %133 = vector.broadcast %cst_34 : f32 to vector<16x36xf32>
    %134 = arith.maximumf %132, %133 : vector<16x36xf32>
    %135 = vector.broadcast %0 : vector<1x36xf32> to vector<16x36xf32>
    %136 = arith.mulf %134, %135 : vector<16x36xf32>
    %137 = vector.extract_strided_slice %136 {offsets = [0, 1], sizes = [1, 16], strides = [1, 1]} : vector<16x36xf32> to vector<1x16xf32>
    %138 = vector.extract_strided_slice %136 {offsets = [1, 1], sizes = [1, 16], strides = [1, 1]} : vector<16x36xf32> to vector<1x16xf32>
    %139 = vector.extract_strided_slice %136 {offsets = [2, 1], sizes = [1, 16], strides = [1, 1]} : vector<16x36xf32> to vector<1x16xf32>
    %140 = vector.extract_strided_slice %136 {offsets = [3, 1], sizes = [1, 16], strides = [1, 1]} : vector<16x36xf32> to vector<1x16xf32>
    %141 = vector.extract_strided_slice %136 {offsets = [4, 1], sizes = [1, 16], strides = [1, 1]} : vector<16x36xf32> to vector<1x16xf32>
    %142 = vector.extract_strided_slice %136 {offsets = [5, 1], sizes = [1, 16], strides = [1, 1]} : vector<16x36xf32> to vector<1x16xf32>
    %143 = vector.extract_strided_slice %136 {offsets = [6, 1], sizes = [1, 16], strides = [1, 1]} : vector<16x36xf32> to vector<1x16xf32>
    %144 = vector.extract_strided_slice %136 {offsets = [7, 1], sizes = [1, 16], strides = [1, 1]} : vector<16x36xf32> to vector<1x16xf32>
    %145 = vector.extract_strided_slice %136 {offsets = [8, 1], sizes = [1, 16], strides = [1, 1]} : vector<16x36xf32> to vector<1x16xf32>
    %146 = vector.extract_strided_slice %136 {offsets = [9, 1], sizes = [1, 16], strides = [1, 1]} : vector<16x36xf32> to vector<1x16xf32>
    %147 = vector.extract_strided_slice %136 {offsets = [10, 1], sizes = [1, 16], strides = [1, 1]} : vector<16x36xf32> to vector<1x16xf32>
    %148 = vector.extract_strided_slice %136 {offsets = [11, 1], sizes = [1, 16], strides = [1, 1]} : vector<16x36xf32> to vector<1x16xf32>
    %149 = vector.extract_strided_slice %136 {offsets = [12, 1], sizes = [1, 16], strides = [1, 1]} : vector<16x36xf32> to vector<1x16xf32>
    %150 = vector.extract_strided_slice %136 {offsets = [13, 1], sizes = [1, 16], strides = [1, 1]} : vector<16x36xf32> to vector<1x16xf32>
    %151 = vector.extract_strided_slice %136 {offsets = [14, 1], sizes = [1, 16], strides = [1, 1]} : vector<16x36xf32> to vector<1x16xf32>
    %152 = vector.extract_strided_slice %136 {offsets = [15, 1], sizes = [1, 16], strides = [1, 1]} : vector<16x36xf32> to vector<1x16xf32>
    %153 = tpu.concatenate %137, %138, %139, %140, %141, %142, %143, %144, %145, %146, %147, %148, %149, %150, %151, %152 in 1 : vector<1x16xf32>, vector<1x16xf32>, vector<1x16xf32>, vector<1x16xf32>, vector<1x16xf32>, vector<1x16xf32>, vector<1x16xf32>, vector<1x16xf32>, vector<1x16xf32>, vector<1x16xf32>, vector<1x16xf32>, vector<1x16xf32>, vector<1x16xf32>, vector<1x16xf32>, vector<1x16xf32>, vector<1x16xf32> -> vector<1x256xf32>
    %154 = vector.extract_strided_slice %136 {offsets = [0, 19], sizes = [1, 16], strides = [1, 1]} : vector<16x36xf32> to vector<1x16xf32>
    %155 = vector.extract_strided_slice %136 {offsets = [1, 19], sizes = [1, 16], strides = [1, 1]} : vector<16x36xf32> to vector<1x16xf32>
    %156 = vector.extract_strided_slice %136 {offsets = [2, 19], sizes = [1, 16], strides = [1, 1]} : vector<16x36xf32> to vector<1x16xf32>
    %157 = vector.extract_strided_slice %136 {offsets = [3, 19], sizes = [1, 16], strides = [1, 1]} : vector<16x36xf32> to vector<1x16xf32>
    %158 = vector.extract_strided_slice %136 {offsets = [4, 19], sizes = [1, 16], strides = [1, 1]} : vector<16x36xf32> to vector<1x16xf32>
    %159 = vector.extract_strided_slice %136 {offsets = [5, 19], sizes = [1, 16], strides = [1, 1]} : vector<16x36xf32> to vector<1x16xf32>
    %160 = vector.extract_strided_slice %136 {offsets = [6, 19], sizes = [1, 16], strides = [1, 1]} : vector<16x36xf32> to vector<1x16xf32>
    %161 = vector.extract_strided_slice %136 {offsets = [7, 19], sizes = [1, 16], strides = [1, 1]} : vector<16x36xf32> to vector<1x16xf32>
    %162 = vector.extract_strided_slice %136 {offsets = [8, 19], sizes = [1, 16], strides = [1, 1]} : vector<16x36xf32> to vector<1x16xf32>
    %163 = vector.extract_strided_slice %136 {offsets = [9, 19], sizes = [1, 16], strides = [1, 1]} : vector<16x36xf32> to vector<1x16xf32>
    %164 = vector.extract_strided_slice %136 {offsets = [10, 19], sizes = [1, 16], strides = [1, 1]} : vector<16x36xf32> to vector<1x16xf32>
    %165 = vector.extract_strided_slice %136 {offsets = [11, 19], sizes = [1, 16], strides = [1, 1]} : vector<16x36xf32> to vector<1x16xf32>
    %166 = vector.extract_strided_slice %136 {offsets = [12, 19], sizes = [1, 16], strides = [1, 1]} : vector<16x36xf32> to vector<1x16xf32>
    %167 = vector.extract_strided_slice %136 {offsets = [13, 19], sizes = [1, 16], strides = [1, 1]} : vector<16x36xf32> to vector<1x16xf32>
    %168 = vector.extract_strided_slice %136 {offsets = [14, 19], sizes = [1, 16], strides = [1, 1]} : vector<16x36xf32> to vector<1x16xf32>
    %169 = vector.extract_strided_slice %136 {offsets = [15, 19], sizes = [1, 16], strides = [1, 1]} : vector<16x36xf32> to vector<1x16xf32>
    %170 = tpu.concatenate %154, %155, %156, %157, %158, %159, %160, %161, %162, %163, %164, %165, %166, %167, %168, %169 in 1 : vector<1x16xf32>, vector<1x16xf32>, vector<1x16xf32>, vector<1x16xf32>, vector<1x16xf32>, vector<1x16xf32>, vector<1x16xf32>, vector<1x16xf32>, vector<1x16xf32>, vector<1x16xf32>, vector<1x16xf32>, vector<1x16xf32>, vector<1x16xf32>, vector<1x16xf32>, vector<1x16xf32>, vector<1x16xf32> -> vector<1x256xf32>
    %171 = tpu.concatenate %153, %170 in 0 : vector<1x256xf32>, vector<1x256xf32> -> vector<2x256xf32>
    %c56 = arith.constant 56 : index
    %c0_35 = arith.constant 0 : index
    %172 = vector.load %arg2[%c56, %c0_35] : memref<424x256xf32, #tpu.memory_space<vmem>>, vector<257x16xf32>
    %173 = vector.extract_strided_slice %172 {offsets = [0, 0], sizes = [256, 16], strides = [1, 1]} : vector<257x16xf32> to vector<256x16xf32>
    %cst_36 = arith.constant dense<0.000000e+00> : vector<2x16xf32>
    %174 = tpu.matmul %171, %173, %cst_36 {dimension_numbers = #tpu.dot_dimension_numbers<[1], [0], [0], [1], [0, 0, 1, 1], [], []>} : vector<2x256xf32>, vector<256x16xf32>, vector<2x16xf32> -> vector<2x16xf32>
    %175 = vector.extract_strided_slice %172 {offsets = [256, 0], sizes = [1, 16], strides = [1, 1]} : vector<257x16xf32> to vector<1x16xf32>
    %176 = vector.broadcast %175 : vector<1x16xf32> to vector<2x16xf32>
    %177 = arith.addf %174, %176 : vector<2x16xf32>
    %178 = vector.extract_strided_slice %177 {offsets = [0, 0], sizes = [2, 8], strides = [1, 1]} : vector<2x16xf32> to vector<2x8xf32>
    %179 = vector.extract_strided_slice %177 {offsets = [0, 8], sizes = [2, 8], strides = [1, 1]} : vector<2x16xf32> to vector<2x8xf32>
    %180 = math.exp %179 : vector<2x8xf32>
    %181 = arith.mulf %2, %180 : vector<2x8xf32>
    %182 = arith.addf %181, %178 : vector<2x8xf32>
    %c320 = arith.constant 320 : index
    %c0_37 = arith.constant 0 : index
    %183 = vector.load %arg2[%c320, %c0_37] : memref<424x256xf32, #tpu.memory_space<vmem>>, vector<9x256xf32>
    %184 = vector.extract_strided_slice %183 {offsets = [0, 0], sizes = [8, 256], strides = [1, 1]} : vector<9x256xf32> to vector<8x256xf32>
    %cst_38 = arith.constant dense<0.000000e+00> : vector<2x256xf32>
    %185 = tpu.matmul %182, %184, %cst_38 {dimension_numbers = #tpu.dot_dimension_numbers<[1], [0], [0], [1], [0, 0, 1, 1], [], []>} : vector<2x8xf32>, vector<8x256xf32>, vector<2x256xf32> -> vector<2x256xf32>
    %186 = vector.extract_strided_slice %183 {offsets = [8, 0], sizes = [1, 256], strides = [1, 1]} : vector<9x256xf32> to vector<1x256xf32>
    %187 = vector.broadcast %186 : vector<1x256xf32> to vector<2x256xf32>
    %188 = arith.addf %185, %187 : vector<2x256xf32>
    %cst_39 = arith.constant 0.000000e+00 : f32
    %189 = vector.broadcast %cst_39 : f32 to vector<16x1xf32>
    %190 = vector.extract_strided_slice %188 {offsets = [0, 0], sizes = [1, 16], strides = [1, 1]} : vector<2x256xf32> to vector<1x16xf32>
    %191 = vector.extract_strided_slice %188 {offsets = [0, 16], sizes = [1, 16], strides = [1, 1]} : vector<2x256xf32> to vector<1x16xf32>
    %192 = vector.extract_strided_slice %188 {offsets = [0, 32], sizes = [1, 16], strides = [1, 1]} : vector<2x256xf32> to vector<1x16xf32>
    %193 = vector.extract_strided_slice %188 {offsets = [0, 48], sizes = [1, 16], strides = [1, 1]} : vector<2x256xf32> to vector<1x16xf32>
    %194 = vector.extract_strided_slice %188 {offsets = [0, 64], sizes = [1, 16], strides = [1, 1]} : vector<2x256xf32> to vector<1x16xf32>
    %195 = vector.extract_strided_slice %188 {offsets = [0, 80], sizes = [1, 16], strides = [1, 1]} : vector<2x256xf32> to vector<1x16xf32>
    %196 = vector.extract_strided_slice %188 {offsets = [0, 96], sizes = [1, 16], strides = [1, 1]} : vector<2x256xf32> to vector<1x16xf32>
    %197 = vector.extract_strided_slice %188 {offsets = [0, 112], sizes = [1, 16], strides = [1, 1]} : vector<2x256xf32> to vector<1x16xf32>
    %198 = vector.extract_strided_slice %188 {offsets = [0, 128], sizes = [1, 16], strides = [1, 1]} : vector<2x256xf32> to vector<1x16xf32>
    %199 = vector.extract_strided_slice %188 {offsets = [0, 144], sizes = [1, 16], strides = [1, 1]} : vector<2x256xf32> to vector<1x16xf32>
    %200 = vector.extract_strided_slice %188 {offsets = [0, 160], sizes = [1, 16], strides = [1, 1]} : vector<2x256xf32> to vector<1x16xf32>
    %201 = vector.extract_strided_slice %188 {offsets = [0, 176], sizes = [1, 16], strides = [1, 1]} : vector<2x256xf32> to vector<1x16xf32>
    %202 = vector.extract_strided_slice %188 {offsets = [0, 192], sizes = [1, 16], strides = [1, 1]} : vector<2x256xf32> to vector<1x16xf32>
    %203 = vector.extract_strided_slice %188 {offsets = [0, 208], sizes = [1, 16], strides = [1, 1]} : vector<2x256xf32> to vector<1x16xf32>
    %204 = vector.extract_strided_slice %188 {offsets = [0, 224], sizes = [1, 16], strides = [1, 1]} : vector<2x256xf32> to vector<1x16xf32>
    %205 = vector.extract_strided_slice %188 {offsets = [0, 240], sizes = [1, 16], strides = [1, 1]} : vector<2x256xf32> to vector<1x16xf32>
    %206 = tpu.concatenate %190, %191, %192, %193, %194, %195, %196, %197, %198, %199, %200, %201, %202, %203, %204, %205 in 0 : vector<1x16xf32>, vector<1x16xf32>, vector<1x16xf32>, vector<1x16xf32>, vector<1x16xf32>, vector<1x16xf32>, vector<1x16xf32>, vector<1x16xf32>, vector<1x16xf32>, vector<1x16xf32>, vector<1x16xf32>, vector<1x16xf32>, vector<1x16xf32>, vector<1x16xf32>, vector<1x16xf32>, vector<1x16xf32> -> vector<16x16xf32>
    %207 = vector.extract_strided_slice %188 {offsets = [1, 0], sizes = [1, 16], strides = [1, 1]} : vector<2x256xf32> to vector<1x16xf32>
    %208 = vector.extract_strided_slice %188 {offsets = [1, 16], sizes = [1, 16], strides = [1, 1]} : vector<2x256xf32> to vector<1x16xf32>
    %209 = vector.extract_strided_slice %188 {offsets = [1, 32], sizes = [1, 16], strides = [1, 1]} : vector<2x256xf32> to vector<1x16xf32>
    %210 = vector.extract_strided_slice %188 {offsets = [1, 48], sizes = [1, 16], strides = [1, 1]} : vector<2x256xf32> to vector<1x16xf32>
    %211 = vector.extract_strided_slice %188 {offsets = [1, 64], sizes = [1, 16], strides = [1, 1]} : vector<2x256xf32> to vector<1x16xf32>
    %212 = vector.extract_strided_slice %188 {offsets = [1, 80], sizes = [1, 16], strides = [1, 1]} : vector<2x256xf32> to vector<1x16xf32>
    %213 = vector.extract_strided_slice %188 {offsets = [1, 96], sizes = [1, 16], strides = [1, 1]} : vector<2x256xf32> to vector<1x16xf32>
    %214 = vector.extract_strided_slice %188 {offsets = [1, 112], sizes = [1, 16], strides = [1, 1]} : vector<2x256xf32> to vector<1x16xf32>
    %215 = vector.extract_strided_slice %188 {offsets = [1, 128], sizes = [1, 16], strides = [1, 1]} : vector<2x256xf32> to vector<1x16xf32>
    %216 = vector.extract_strided_slice %188 {offsets = [1, 144], sizes = [1, 16], strides = [1, 1]} : vector<2x256xf32> to vector<1x16xf32>
    %217 = vector.extract_strided_slice %188 {offsets = [1, 160], sizes = [1, 16], strides = [1, 1]} : vector<2x256xf32> to vector<1x16xf32>
    %218 = vector.extract_strided_slice %188 {offsets = [1, 176], sizes = [1, 16], strides = [1, 1]} : vector<2x256xf32> to vector<1x16xf32>
    %219 = vector.extract_strided_slice %188 {offsets = [1, 192], sizes = [1, 16], strides = [1, 1]} : vector<2x256xf32> to vector<1x16xf32>
    %220 = vector.extract_strided_slice %188 {offsets = [1, 208], sizes = [1, 16], strides = [1, 1]} : vector<2x256xf32> to vector<1x16xf32>
    %221 = vector.extract_strided_slice %188 {offsets = [1, 224], sizes = [1, 16], strides = [1, 1]} : vector<2x256xf32> to vector<1x16xf32>
    %222 = vector.extract_strided_slice %188 {offsets = [1, 240], sizes = [1, 16], strides = [1, 1]} : vector<2x256xf32> to vector<1x16xf32>
    %223 = tpu.concatenate %207, %208, %209, %210, %211, %212, %213, %214, %215, %216, %217, %218, %219, %220, %221, %222 in 0 : vector<1x16xf32>, vector<1x16xf32>, vector<1x16xf32>, vector<1x16xf32>, vector<1x16xf32>, vector<1x16xf32>, vector<1x16xf32>, vector<1x16xf32>, vector<1x16xf32>, vector<1x16xf32>, vector<1x16xf32>, vector<1x16xf32>, vector<1x16xf32>, vector<1x16xf32>, vector<1x16xf32>, vector<1x16xf32> -> vector<16x16xf32>
    %224 = tpu.concatenate %189, %206, %189, %189, %223, %189 in 1 : vector<16x1xf32>, vector<16x16xf32>, vector<16x1xf32>, vector<16x1xf32>, vector<16x16xf32>, vector<16x1xf32> -> vector<16x36xf32>
    %c336 = arith.constant 336 : index
    %c0_40 = arith.constant 0 : index
    %225 = vector.load %arg2[%c336, %c0_40] : memref<424x256xf32, #tpu.memory_space<vmem>>, vector<16x51xf32>
    %226 = vector.extract_strided_slice %225 {offsets = [0, 0], sizes = [16, 49], strides = [1, 1]} : vector<16x51xf32> to vector<16x49xf32>
    %227 = vector.extract_strided_slice %225 {offsets = [0, 49], sizes = [16, 1], strides = [1, 1]} : vector<16x51xf32> to vector<16x1xf32>
    %228 = vector.extract_strided_slice %225 {offsets = [0, 50], sizes = [16, 1], strides = [1, 1]} : vector<16x51xf32> to vector<16x1xf32>
    %cst_41 = arith.constant 0.000000e+00 : f32
    %229 = vector.broadcast %cst_41 : f32 to vector<16x1xf32>
    %230 = vector.extract_strided_slice %224 {offsets = [0, 0], sizes = [16, 35], strides = [1, 1]} : vector<16x36xf32> to vector<16x35xf32>
    %231 = tpu.concatenate %229, %230 in 1 : vector<16x1xf32>, vector<16x35xf32> -> vector<16x36xf32>
    %cst_42 = arith.constant 0.000000e+00 : f32
    %232 = vector.broadcast %cst_42 : f32 to vector<16x1xf32>
    %233 = vector.extract_strided_slice %224 {offsets = [0, 1], sizes = [16, 35], strides = [1, 1]} : vector<16x36xf32> to vector<16x35xf32>
    %234 = tpu.concatenate %233, %232 in 1 : vector<16x35xf32>, vector<16x1xf32> -> vector<16x36xf32>
    %235 = tpu.concatenate %231, %224, %234, %0 in 0 : vector<16x36xf32>, vector<16x36xf32>, vector<16x36xf32>, vector<1x36xf32> -> vector<49x36xf32>
    %cst_43 = arith.constant dense<0.000000e+00> : vector<16x36xf32>
    %236 = tpu.matmul %226, %235, %cst_43 {dimension_numbers = #tpu.dot_dimension_numbers<[1], [0], [0], [1], [0, 0, 1, 1], [], []>} : vector<16x49xf32>, vector<49x36xf32>, vector<16x36xf32> -> vector<16x36xf32>
    %237 = vector.broadcast %0 : vector<1x36xf32> to vector<16x36xf32>
    %238 = arith.mulf %236, %237 : vector<16x36xf32>
    %cst_44 = arith.constant dense<0.000000e+00> : vector<16xf32>
    %239 = vector.multi_reduction <add>, %238, %cst_44 [1] : vector<16x36xf32> to vector<16xf32>
    %240 = vector.shape_cast %239 : vector<16xf32> to vector<16x1xf32>
    %241 = arith.mulf %238, %236 : vector<16x36xf32>
    %cst_45 = arith.constant dense<0.000000e+00> : vector<16xf32>
    %242 = vector.multi_reduction <add>, %241, %cst_45 [1] : vector<16x36xf32> to vector<16xf32>
    %243 = vector.shape_cast %242 : vector<16xf32> to vector<16x1xf32>
    %cst_46 = arith.constant 3.200000e+01 : f32
    %244 = vector.broadcast %cst_46 : f32 to vector<16x1xf32>
    %245 = arith.divf %240, %244 : vector<16x1xf32>
    %cst_47 = arith.constant 3.200000e+01 : f32
    %246 = vector.broadcast %cst_47 : f32 to vector<16x1xf32>
    %247 = arith.divf %243, %246 : vector<16x1xf32>
    %248 = arith.mulf %245, %245 : vector<16x1xf32>
    %249 = arith.subf %247, %248 : vector<16x1xf32>
    %cst_48 = arith.constant 9.99999974E-6 : f32
    %250 = vector.broadcast %cst_48 : f32 to vector<16x1xf32>
    %251 = arith.addf %249, %250 : vector<16x1xf32>
    %252 = math.rsqrt %251 : vector<16x1xf32>
    %253 = arith.mulf %252, %227 : vector<16x1xf32>
    %254 = vector.broadcast %245 : vector<16x1xf32> to vector<16x36xf32>
    %255 = arith.subf %236, %254 : vector<16x36xf32>
    %256 = vector.broadcast %253 : vector<16x1xf32> to vector<16x36xf32>
    %257 = arith.mulf %255, %256 : vector<16x36xf32>
    %258 = vector.broadcast %228 : vector<16x1xf32> to vector<16x36xf32>
    %259 = arith.addf %257, %258 : vector<16x36xf32>
    %cst_49 = arith.constant 0.000000e+00 : f32
    %260 = vector.broadcast %cst_49 : f32 to vector<16x36xf32>
    %261 = arith.maximumf %259, %260 : vector<16x36xf32>
    %262 = vector.broadcast %0 : vector<1x36xf32> to vector<16x36xf32>
    %263 = arith.mulf %261, %262 : vector<16x36xf32>
    %c352 = arith.constant 352 : index
    %c0_50 = arith.constant 0 : index
    %264 = vector.load %arg2[%c352, %c0_50] : memref<424x256xf32, #tpu.memory_space<vmem>>, vector<8x51xf32>
    %265 = vector.extract_strided_slice %264 {offsets = [0, 0], sizes = [8, 49], strides = [1, 1]} : vector<8x51xf32> to vector<8x49xf32>
    %266 = vector.extract_strided_slice %264 {offsets = [0, 49], sizes = [8, 1], strides = [1, 1]} : vector<8x51xf32> to vector<8x1xf32>
    %267 = vector.extract_strided_slice %264 {offsets = [0, 50], sizes = [8, 1], strides = [1, 1]} : vector<8x51xf32> to vector<8x1xf32>
    %cst_51 = arith.constant 0.000000e+00 : f32
    %268 = vector.broadcast %cst_51 : f32 to vector<16x1xf32>
    %269 = vector.extract_strided_slice %263 {offsets = [0, 0], sizes = [16, 35], strides = [1, 1]} : vector<16x36xf32> to vector<16x35xf32>
    %270 = tpu.concatenate %268, %269 in 1 : vector<16x1xf32>, vector<16x35xf32> -> vector<16x36xf32>
    %cst_52 = arith.constant 0.000000e+00 : f32
    %271 = vector.broadcast %cst_52 : f32 to vector<16x1xf32>
    %272 = vector.extract_strided_slice %263 {offsets = [0, 1], sizes = [16, 35], strides = [1, 1]} : vector<16x36xf32> to vector<16x35xf32>
    %273 = tpu.concatenate %272, %271 in 1 : vector<16x35xf32>, vector<16x1xf32> -> vector<16x36xf32>
    %274 = tpu.concatenate %270, %263, %273, %0 in 0 : vector<16x36xf32>, vector<16x36xf32>, vector<16x36xf32>, vector<1x36xf32> -> vector<49x36xf32>
    %cst_53 = arith.constant dense<0.000000e+00> : vector<8x36xf32>
    %275 = tpu.matmul %265, %274, %cst_53 {dimension_numbers = #tpu.dot_dimension_numbers<[1], [0], [0], [1], [0, 0, 1, 1], [], []>} : vector<8x49xf32>, vector<49x36xf32>, vector<8x36xf32> -> vector<8x36xf32>
    %276 = vector.broadcast %0 : vector<1x36xf32> to vector<8x36xf32>
    %277 = arith.mulf %275, %276 : vector<8x36xf32>
    %cst_54 = arith.constant dense<0.000000e+00> : vector<8xf32>
    %278 = vector.multi_reduction <add>, %277, %cst_54 [1] : vector<8x36xf32> to vector<8xf32>
    %279 = vector.shape_cast %278 : vector<8xf32> to vector<8x1xf32>
    %280 = arith.mulf %277, %275 : vector<8x36xf32>
    %cst_55 = arith.constant dense<0.000000e+00> : vector<8xf32>
    %281 = vector.multi_reduction <add>, %280, %cst_55 [1] : vector<8x36xf32> to vector<8xf32>
    %282 = vector.shape_cast %281 : vector<8xf32> to vector<8x1xf32>
    %cst_56 = arith.constant 3.200000e+01 : f32
    %283 = vector.broadcast %cst_56 : f32 to vector<8x1xf32>
    %284 = arith.divf %279, %283 : vector<8x1xf32>
    %cst_57 = arith.constant 3.200000e+01 : f32
    %285 = vector.broadcast %cst_57 : f32 to vector<8x1xf32>
    %286 = arith.divf %282, %285 : vector<8x1xf32>
    %287 = arith.mulf %284, %284 : vector<8x1xf32>
    %288 = arith.subf %286, %287 : vector<8x1xf32>
    %cst_58 = arith.constant 9.99999974E-6 : f32
    %289 = vector.broadcast %cst_58 : f32 to vector<8x1xf32>
    %290 = arith.addf %288, %289 : vector<8x1xf32>
    %291 = math.rsqrt %290 : vector<8x1xf32>
    %292 = arith.mulf %291, %266 : vector<8x1xf32>
    %293 = vector.broadcast %284 : vector<8x1xf32> to vector<8x36xf32>
    %294 = arith.subf %275, %293 : vector<8x36xf32>
    %295 = vector.broadcast %292 : vector<8x1xf32> to vector<8x36xf32>
    %296 = arith.mulf %294, %295 : vector<8x36xf32>
    %297 = vector.broadcast %267 : vector<8x1xf32> to vector<8x36xf32>
    %298 = arith.addf %296, %297 : vector<8x36xf32>
    %cst_59 = arith.constant 0.000000e+00 : f32
    %299 = vector.broadcast %cst_59 : f32 to vector<8x36xf32>
    %300 = arith.maximumf %298, %299 : vector<8x36xf32>
    %301 = vector.broadcast %0 : vector<1x36xf32> to vector<8x36xf32>
    %302 = arith.mulf %300, %301 : vector<8x36xf32>
    %c360 = arith.constant 360 : index
    %c0_60 = arith.constant 0 : index
    %303 = vector.load %arg2[%c360, %c0_60] : memref<424x256xf32, #tpu.memory_space<vmem>>, vector<3x27xf32>
    %304 = vector.extract_strided_slice %303 {offsets = [0, 0], sizes = [3, 25], strides = [1, 1]} : vector<3x27xf32> to vector<3x25xf32>
    %305 = vector.extract_strided_slice %303 {offsets = [0, 25], sizes = [3, 1], strides = [1, 1]} : vector<3x27xf32> to vector<3x1xf32>
    %306 = vector.extract_strided_slice %303 {offsets = [0, 26], sizes = [3, 1], strides = [1, 1]} : vector<3x27xf32> to vector<3x1xf32>
    %cst_61 = arith.constant 0.000000e+00 : f32
    %307 = vector.broadcast %cst_61 : f32 to vector<8x1xf32>
    %308 = vector.extract_strided_slice %302 {offsets = [0, 0], sizes = [8, 35], strides = [1, 1]} : vector<8x36xf32> to vector<8x35xf32>
    %309 = tpu.concatenate %307, %308 in 1 : vector<8x1xf32>, vector<8x35xf32> -> vector<8x36xf32>
    %cst_62 = arith.constant 0.000000e+00 : f32
    %310 = vector.broadcast %cst_62 : f32 to vector<8x1xf32>
    %311 = vector.extract_strided_slice %302 {offsets = [0, 1], sizes = [8, 35], strides = [1, 1]} : vector<8x36xf32> to vector<8x35xf32>
    %312 = tpu.concatenate %311, %310 in 1 : vector<8x35xf32>, vector<8x1xf32> -> vector<8x36xf32>
    %313 = tpu.concatenate %309, %302, %312, %0 in 0 : vector<8x36xf32>, vector<8x36xf32>, vector<8x36xf32>, vector<1x36xf32> -> vector<25x36xf32>
    %cst_63 = arith.constant dense<0.000000e+00> : vector<3x36xf32>
    %314 = tpu.matmul %304, %313, %cst_63 {dimension_numbers = #tpu.dot_dimension_numbers<[1], [0], [0], [1], [0, 0, 1, 1], [], []>} : vector<3x25xf32>, vector<25x36xf32>, vector<3x36xf32> -> vector<3x36xf32>
    %315 = vector.broadcast %0 : vector<1x36xf32> to vector<3x36xf32>
    %316 = arith.mulf %314, %315 : vector<3x36xf32>
    %cst_64 = arith.constant dense<0.000000e+00> : vector<3xf32>
    %317 = vector.multi_reduction <add>, %316, %cst_64 [1] : vector<3x36xf32> to vector<3xf32>
    %318 = vector.shape_cast %317 : vector<3xf32> to vector<3x1xf32>
    %319 = arith.mulf %316, %314 : vector<3x36xf32>
    %cst_65 = arith.constant dense<0.000000e+00> : vector<3xf32>
    %320 = vector.multi_reduction <add>, %319, %cst_65 [1] : vector<3x36xf32> to vector<3xf32>
    %321 = vector.shape_cast %320 : vector<3xf32> to vector<3x1xf32>
    %cst_66 = arith.constant 3.200000e+01 : f32
    %322 = vector.broadcast %cst_66 : f32 to vector<3x1xf32>
    %323 = arith.divf %318, %322 : vector<3x1xf32>
    %cst_67 = arith.constant 3.200000e+01 : f32
    %324 = vector.broadcast %cst_67 : f32 to vector<3x1xf32>
    %325 = arith.divf %321, %324 : vector<3x1xf32>
    %326 = arith.mulf %323, %323 : vector<3x1xf32>
    %327 = arith.subf %325, %326 : vector<3x1xf32>
    %cst_68 = arith.constant 9.99999974E-6 : f32
    %328 = vector.broadcast %cst_68 : f32 to vector<3x1xf32>
    %329 = arith.addf %327, %328 : vector<3x1xf32>
    %330 = math.rsqrt %329 : vector<3x1xf32>
    %331 = arith.mulf %330, %305 : vector<3x1xf32>
    %332 = vector.broadcast %323 : vector<3x1xf32> to vector<3x36xf32>
    %333 = arith.subf %314, %332 : vector<3x36xf32>
    %334 = vector.broadcast %331 : vector<3x1xf32> to vector<3x36xf32>
    %335 = arith.mulf %333, %334 : vector<3x36xf32>
    %336 = vector.broadcast %306 : vector<3x1xf32> to vector<3x36xf32>
    %337 = arith.addf %335, %336 : vector<3x36xf32>
    %cst_69 = arith.constant 0.000000e+00 : f32
    %338 = vector.broadcast %cst_69 : f32 to vector<3x36xf32>
    %339 = arith.maximumf %337, %338 : vector<3x36xf32>
    %340 = vector.broadcast %0 : vector<1x36xf32> to vector<3x36xf32>
    %341 = arith.mulf %339, %340 : vector<3x36xf32>
    %342 = vector.extract_strided_slice %341 {offsets = [0, 1], sizes = [1, 16], strides = [1, 1]} : vector<3x36xf32> to vector<1x16xf32>
    %343 = vector.extract_strided_slice %341 {offsets = [1, 1], sizes = [1, 16], strides = [1, 1]} : vector<3x36xf32> to vector<1x16xf32>
    %344 = vector.extract_strided_slice %341 {offsets = [2, 1], sizes = [1, 16], strides = [1, 1]} : vector<3x36xf32> to vector<1x16xf32>
    %345 = tpu.concatenate %342, %343, %344 in 1 : vector<1x16xf32>, vector<1x16xf32>, vector<1x16xf32> -> vector<1x48xf32>
    %346 = vector.extract_strided_slice %341 {offsets = [0, 19], sizes = [1, 16], strides = [1, 1]} : vector<3x36xf32> to vector<1x16xf32>
    %347 = vector.extract_strided_slice %341 {offsets = [1, 19], sizes = [1, 16], strides = [1, 1]} : vector<3x36xf32> to vector<1x16xf32>
    %348 = vector.extract_strided_slice %341 {offsets = [2, 19], sizes = [1, 16], strides = [1, 1]} : vector<3x36xf32> to vector<1x16xf32>
    %349 = tpu.concatenate %346, %347, %348 in 1 : vector<1x16xf32>, vector<1x16xf32>, vector<1x16xf32> -> vector<1x48xf32>
    %350 = tpu.concatenate %345, %349 in 0 : vector<1x48xf32>, vector<1x48xf32> -> vector<2x48xf32>
    %c368 = arith.constant 368 : index
    %c0_70 = arith.constant 0 : index
    %351 = vector.load %arg2[%c368, %c0_70] : memref<424x256xf32, #tpu.memory_space<vmem>>, vector<49x48xf32>
    %352 = vector.extract_strided_slice %351 {offsets = [0, 0], sizes = [48, 48], strides = [1, 1]} : vector<49x48xf32> to vector<48x48xf32>
    %cst_71 = arith.constant dense<0.000000e+00> : vector<2x48xf32>
    %353 = tpu.matmul %350, %352, %cst_71 {dimension_numbers = #tpu.dot_dimension_numbers<[1], [0], [0], [1], [0, 0, 1, 1], [], []>} : vector<2x48xf32>, vector<48x48xf32>, vector<2x48xf32> -> vector<2x48xf32>
    %354 = vector.extract_strided_slice %351 {offsets = [48, 0], sizes = [1, 48], strides = [1, 1]} : vector<49x48xf32> to vector<1x48xf32>
    %355 = vector.broadcast %354 : vector<1x48xf32> to vector<2x48xf32>
    %356 = arith.addf %353, %355 : vector<2x48xf32>
    %357 = tpu.concatenate %356, %178, %179, %182 in 1 : vector<2x48xf32>, vector<2x8xf32>, vector<2x8xf32>, vector<2x8xf32> -> vector<2x72xf32>
    %c0_72 = arith.constant 0 : index
    %c0_73 = arith.constant 0 : index
    %358 = vector.load %arg3[%c0_72, %c0_73] : memref<2x72xf32, #tpu.memory_space<vmem>>, vector<2x72xf32>
    tpu.vector_store %arg3[%c0_72, %c0_73], %357 {strides = array<i32>} : memref<2x72xf32, #tpu.memory_space<vmem>>, vector<2x72xf32>,
    return
  }
}

</mosaic_0001>

<bundles_post_ra>
// kernel: tpu_custom_call.1
= control target key start
LH: loop header
LB: loop body
LE: loop exit
PB: predicated region body
PF: predicated region fallthrough
CT: control target
= control target key end

     0   :  { %8 = vsyncpa [#allocation3], 0  ;;  %s2671_s0 = inlined_call_operand.hbm [shape: f32[2,36], index: 0, kind: input, shape index: {}]   ;;  %s2672_s1 = inlined_call_operand.vmem [shape: f32[2,8], index: 1, kind: input, shape index: {}]   ;;  %s2673_s2 = inlined_call_operand.hbm [shape: f32[424,256], index: 2, kind: input, shape index: {}]   ;;  %s2674_s3 = inlined_call_operand.hbm [shape: f32[2,72], index: 3, kind: output, shape index: {}]  }
   0x1   :  { %9 = vsyncpa [#allocation6], 0 }
   0x2   :  { %10 = vsyncpa [#allocation4], 0  ;;  %s2245_s12 = smov [#allocation2]   ;;  %s2246_s14 = smov [#allocation5]  }
   0x3   :  { %s17_s13 = sshll.u32 %s2245_s12, 4  ;;  %s28_s15 = sshll.u32 %s2246_s14, 4  ;;  %s18_s13 = int_to_ptr.vmem [resolvable:$true] %s17_s13  ;;  %s2306_s15 = int_to_ptr.vmem [resolvable:$true] %s28_s15 }
   0x4   :  { %s2173_s18 = scalar_lea.hbm %s2671_s0, 32 }
   0x5   :  { %p2174_p0 = scmp.ne.s32.totalorder %s2671_s0, %s2173_s18  ;;  %p2177_p1 = scmp.lt.u32.totalorder %s2173_s18, %s2671_s0 }
   0x7   :  { %p2179_p2 = pnand %p2177_p1, %p2174_p0 }
   0x9   :  { %2182 = shalt.err (!%p2179_p2)
}
   0xa   :  { %s2183_s23 = scalar_lea.vmem %s18_s13, 32  ;;  %p2188_p4 = scmp.lt.s32.totalorder %s18_s13, %s18_s13 }
   0xb   :  { %p2184_p3 = scmp.ne.s32.totalorder %s18_s13, %s2183_s23  ;;  %p2189_p5 = scmp.lt.s32.totalorder %s2183_s23, %s2183_s23 }
   0xd   :  { %p2190_p6 = por %p2189_p5, %p2188_p4 }
   0xf   :  { %p2191_p7 = pnand %p2190_p6, %p2184_p3 }
  0x11   :  { %2194 = shalt.err (!%p2191_p7)
}
  0x12   :  { %20 = dma.hbm_to_vmem [thread:$0]  %s2671_s0, 32, %s18_s13, [#allocation3]  }
  0x13   :  { %s2195_s28 = scalar_lea.hbm %s2673_s2, 13568 }
  0x14   :  { %p2196_p8 = scmp.ne.s32.totalorder %s2673_s2, %s2195_s28  ;;  %p2199_p9 = scmp.lt.u32.totalorder %s2195_s28, %s2673_s2 }
  0x16   :  { %p2201_p10 = pnand %p2199_p9, %p2196_p8 }
  0x18   :  { %2204 = shalt.err (!%p2201_p10)
}
  0x19   :  { %s2205_s6 = scalar_lea.vmem %s2306_s15, 13568  ;;  %p2210_p12 = scmp.lt.s32.totalorder %s2306_s15, %s2306_s15 }
  0x1a   :  { %p2206_p11 = scmp.ne.s32.totalorder %s2306_s15, %s2205_s6  ;;  %p2211_p13 = scmp.lt.s32.totalorder %s2205_s6, %s2205_s6 }
  0x1c   :  { %p2212_p0 = por %p2211_p13, %p2210_p12 }
  0x1e   :  { %p2213_p1 = pnand %p2212_p0, %p2206_p11 }
  0x20   :  { %2216 = shalt.err (!%p2213_p1)
}
  0x21   :  { %s2247_s0 = smov 256   ;;  %s2248_s7 = smov 16  }
  0x22   :  { %34 = dma.hbm_to_vmem [thread:$0]  %s2673_s2, 13568, %s2306_s15, [#allocation6], %s2247_s0, %s2247_s0, %s2248_s7  }
  0x23   :  { %2239 = dma.done.wait [#allocation3], 32  }
  0x24   :  { %2240 = vsyncadd [#allocation3], 4294967264 }
  0x25   :  { %2241 = dma.done.wait [#allocation6], 13568  }
  0x26   :  { %2242 = vsyncadd [#allocation6], 4294953728  ;;  %v2249_v0 = vmov 2   ;;  %v2250_v1 = vmov 1   ;;  %v44_v2 = vld [vmem:[#allocation5 + $0x10] sm:$0xff]  ;;  %v2251_v3 = vmov 0   ;;  %v55_v4 = vlaneseq }
  0x27   :  { %1947 = vset.pattern.permute.xlu0 %v2249_v0  ;;  %1949 = vset.pattern.permute.xlu1 %v2250_v1  ;;  %v42_v8 = vld [vmem:[#allocation2] sm:$0x3]  ;;  %v2252_v10 = vmov 0.0|0.0   ;;  %v2339_v13 = vld [vmem:[#allocation5] ss:$0 sm:$0xff]  ;;  %vm2253_vm0 = vmmov 0  }
  0x28   :  { %47 = vperm.xlu0 %1947, %v44_v2   ;;  %62 = vperm.xlu1 %1949, %v44_v2   ;;  %v56_v5 = vshrl.u32 %v55_v4, 7  ;;  %v2254_v19 = vmov 0.0   ;;  %s2255_s2 = smov 1   ;;  %s2256_s10 = smov 127   ;;  %vm76_vm1 = vcmask 7168   ;;  %vm2257_vm3 = vmmov 1  }
  0x29   :  { %1792 = vmatprep.subr.bf16.mxu0 %v2252_v10  ;;  %1701 = vmatprep.mubr.msk.f32.mxu0 %vm2253_vm0, %v2254_v19  ;;  %vm2347_vm2 = vmneg %vm76_vm1  ;;  %vm81_vm5 = vcmask 285696   ;;  %vm87_vm6 = vcmask 1040384   ;;  %v71_v29 = vld [vmem:[#allocation5 + $0x20] sm:$0xff]  ;;  %vm2675_vm8 = vcmask 203776   ;;  %vm2676_vm9 = vcmask 293888   ;;  %v192_v52 = vld [vmem:[#allocation5 + $0x30] sm:$0xff] }
  0x2a   :  { %v57_v6 = vsub.s32 0, %v56_v5  ;;  %v67_v7 = vsub.s32 1, %v56_v5  ;;  %vm2353_vm4 = vmpackc.low %vm2257_vm3, %vm2347_vm2  ;;  %v2258_v36 = vmov 25   ;;  %v2259_v37 = vmov 26   ;;  %1712 = vmatprep.mubr.msk.f32.mxu1 %vm2675_vm8, %v192_v52  ;;  %v193_v59 = vld [vmem:[#allocation5 + $0x40] sm:$0xff]  ;;  %s2262_s11 = smov 109  }
  0x2b   :  { %vm2362_vm7 = vmpackc.low %vm87_vm6, %vm81_vm5  ;;  %vm362_vm10 = vcmask 400384   ;;  %s2263_s12 = smov 29   ;;  %s2264_s13 = smov 45   ;;  %vm566_vm13 = vcmask 130048   ;;  %vm2679_vm14 = vcmask 261120   ;;  %vm2678_vm15 = vcmask 392192  }
  0x2c   :  { %1948 = vset.pattern.permute.xlu0 %v2251_v3  ;;  %v58_v11 = vrot.slane %v42_v8, %v57_v6  ;;  %v68_v12 = vrot.slane %v42_v8, %v67_v7  ;;  %1951 = vset.pattern.permute.xlu1 %v2259_v37  ;;  %vm2408_vm11 = vmpackc.low %vm2347_vm2, %vm2347_vm2  ;;  %s2265_s14 = smov 125   ;;  %s2266_s15 = smov 61   ;;  %vm2677_vm2 = vcmask 523264   ;;  %vm574_vm3 = vcmask 654336  }
  0x2d   :  { %52 = vperm.xlu0 %1948, %v44_v2   ;;  %vm2418_vm12 = vmpackc.low %vm81_vm5, %vm81_vm5  ;;  %s2267_s16 = smov 13   ;;  %s2268_s17 = smov 77  }
  0x2e   :  { %s2269_s18 = smov 15   ;;  %s2270_s19 = smov 93  }
  0x2f   :  { %s2271_s20 = smov 31   ;;  %s2272_s21 = smov 111  }
  0x30   :  { %s2273_s22 = smov 47   ;;  %s2274_s23 = smov 63  }
  0x31   :  { %1950 = vset.pattern.permute.xlu0 %v2258_v36  ;;  %s2275_s24 = smov 79   ;;  %s2276_s25 = smov 95  }
  0x32   :  { %s2277_s26 = smov 120   ;;  %s2279_s29 = smov 96  }
  0x33   :  { %s2280_s30 = smov 64   ;;  %s2281_s4 = smov 80  }
  0x34   :  { %s2282_s5 = smov 48   ;;  %s2283_s6 = smov 32  }
  0x35   :  { %s2284_s0 = smov 19  }
  0xa7   :  { %v48_v9 = vpop.permute.xlu0 %47  ;;  %v63_v14 = vpop.permute.xlu1 %62 }
  0xa8   :  { %v50_v16 = vmul.f32 %v48_v9, %v2339_v13  ;;  %v69_v18 = vmul.f32 %v68_v12, %v63_v14 }
  0xac   :  { %v53_v15 = vpop.permute.xlu0 %52 }
  0xad   :  { %v59_v17 = vmul.f32 %v58_v11, %v53_v15 }
  0xaf   :  { %v60_v20 = vadd.f32 %v59_v17, %v50_v16 }
  0xb1   :  { %v70_v21 = vadd.f32 %v69_v18, %v60_v20 }
  0xb3   :  { %73 = vrot.lane.b32.xlu1 %v70_v21, %s2255_s2 }
  0xb7   :  { %78 = vrot.lane.b32.xlu1 %v70_v21, %s2256_s10 }
 0x125   :  { %v74_v23 = vpop.permute.xlu1 %73 }
 0x126   :  { %v1793_v25 = vpack.c.bf16 %v70_v21, %v74_v23 }
 0x128   :  { %1795 = vmatpush3.bf16.msk.msra.mxu0 %vm2353_vm4, %v1793_v25 }
 0x129   :  { %v79_v26 = vpop.permute.xlu1 %78  ;;  %1796 = vmatprep.subr.bf16.mxu0 %v2252_v10 }
 0x12a   :  { %v1797_v28 = vpack.c.bf16 %v2339_v13, %v79_v26 }
 0x12c   :  { %1799 = vmatpush3.bf16.msk.msra.mxu0 %vm2362_vm7, %v1797_v28 }
 0x12f   :  { %1702 = vmatmul.mubr.msk.f32.vlgmr.msra.gmra.mrb[0].mxu0 %vm2675_vm8, %v71_v29 }
 0x202   :  { %v157_v30 = vpop.f32.mrb[0].mxu0 }
 0x203   :  { %v1703_v31 = vpop.f32.mrb[1].mxu0  ;;  %v161_v32 = vmul.f32 %v157_v30, %v2339_v13 }
 0x205   :  { %v163_v33 = vsel %vm2676_vm9, %v161_v32, 0.0  ;;  %v166_v34 = vmul.f32 %v161_v32, %v157_v30 }
 0x206   :  { %164 = vadd.xlane.f32.xlu0 %v163_v33 }
 0x207   :  { %v167_v35 = vsel %vm2676_vm9, %v166_v34, 0.0 }
 0x208   :  { %168 = vadd.xlane.f32.xlu1 %v167_v35 }
 0x219   :  { %186 = vperm.xlu1 %1951, %v71_v29  }
 0x293   :  { %v165_v38 = vpop.xlane.xlu0 %164 }
 0x294   :  { %v171_v39 = vmul.f32 0.03125, %v165_v38 }
 0x295   :  { %v169_v40 = vpop.xlane.xlu1 %168 }
 0x296   :  { %v173_v41 = vmul.f32 %v171_v39, %v171_v39  ;;  %v172_v42 = vmul.f32 0.03125, %v169_v40  ;;  %v178_v43 = vsub.f32 %v157_v30, %v171_v39 }
 0x298   :  { %v174_v44 = vsub.f32 %v172_v42, %v173_v41 }
 0x299   :  { %v187_v49 = vpop.permute.xlu1 %186 }
 0x29a   :  { %v175_v45 = vadd.f32 1e-05, %v174_v44 }
 0x29c   :  { %2152 = vrsqrt.f32 %v175_v45 }
 0x2a6   :  { %v2153_v46 = vpop.eup %2152 }
 0x2a7   :  { %v177_v47 = vmul.f32 %v2153_v46, %v71_v29 }
 0x2a9   :  { %181 = vperm.xlu0 %1950, %v177_v47  }
 0x328   :  { %v182_v48 = vpop.permute.xlu0 %181 }
 0x329   :  { %v184_v50 = vmul.f32 %v182_v48, %v178_v43  ;;  %v2401_v48 = vld [vmem:[#allocation5 + $0x50] sm:$0xff] }
 0x32a   :  { %1729 = vmatprep.mubr.msk.f32.mxu0 %vm362_vm10, %v2401_v48 }
 0x32b   :  { %v189_v51 = vadd.f32 %v187_v49, %v184_v50 }
 0x32d   :  { %v190_v53 = vmax.f32 %v189_v51, 0.0 }
 0x32f   :  { %v191_v54 = vmul.f32 %v190_v53, %v2339_v13 }
 0x331   :  { %195 = vrot.lane.b32.xlu1 %v191_v54, %s2255_s2 }
 0x335   :  { %199 = vrot.lane.b32.xlu1 %v191_v54, %s2256_s10 }
 0x3a3   :  { %v196_v55 = vpop.permute.xlu1 %195 }
 0x3a4   :  { %v1800_v56 = vpack.c.bf16 %v191_v54, %v196_v55 }
 0x3a6   :  { %1802 = vmatprep.subr.msk.bf16.mxu1 %vm2353_vm4, %v1800_v56 }
 0x3a7   :  { %1805 = vmatpush3.bf16.msk.msra.mxu1 %vm2353_vm4, %v1800_v56  ;;  %v200_v57 = vpop.permute.xlu1 %199 }
 0x3a8   :  { %v1806_v58 = vpack.c.bf16 %v2339_v13, %v200_v57 }
 0x3aa   :  { %1808 = vmatprep.subr.msk.bf16.mxu1 %vm2362_vm7, %v1806_v58 }
 0x3ab   :  { %1811 = vmatpush3.bf16.msk.msra.mxu1 %vm2362_vm7, %v1806_v58  ;;  %v343_v58 = vld [vmem:[#allocation5 + $0x60] sm:$0xff] }
 0x3ae   :  { %1713 = vmatmul.mubr.msk.f32.vlgmr.msra.gmra.mrb[0].mxu1 %vm2675_vm8, %v193_v59  ;;  %vm576_vm8 = vcmask 785408  }
 0x481   :  { %v1714_v60 = vpop.f32.mrb[0].mxu1 }
 0x482   :  { %v275_v61 = vpop.f32.mrb[1].mxu1  ;;  %v285_v62 = vmul.f32 %v1714_v60, %v2339_v13 }
 0x483   :  { %v284_v63 = vmul.f32 %v275_v61, %v2339_v13 }
 0x484   :  { %v289_v0 = vsel %vm2676_vm9, %v285_v62, 0.0  ;;  %v293_v4 = vmul.f32 %v1714_v60, %v285_v62 }
 0x485   :  { %290 = vadd.xlane.f32.xlu0 %v289_v0  ;;  %v286_v1 = vsel %vm2676_vm9, %v284_v63, 0.0  ;;  %v292_v2 = vmul.f32 %v284_v63, %v275_v61 }
 0x486   :  { %287 = vadd.xlane.f32.xlu1 %v286_v1  ;;  %v297_v5 = vsel %vm2676_vm9, %v293_v4, 0.0 }
 0x487   :  { %v294_v3 = vsel %vm2676_vm9, %v292_v2, 0.0 }
 0x48a   :  { %295 = vadd.xlane.f32.xlu1 %v294_v3 }
 0x48e   :  { %298 = vadd.xlane.f32.xlu1 %v297_v5  ;;  %v2260_v5 = vmov 49  }
 0x49f   :  { %329 = vperm.xlu1 %1951, %v192_v52  }
 0x4a3   :  { %1952 = vset.pattern.permute.xlu1 %v2258_v36 }
 0x512   :  { %v291_v6 = vpop.xlane.xlu0 %290 }
 0x513   :  { %v301_v7 = vmul.f32 0.03125, %v291_v6  ;;  %v288_v8 = vpop.xlane.xlu1 %287 }
 0x514   :  { %v300_v9 = vmul.f32 0.03125, %v288_v8 }
 0x515   :  { %v315_v11 = vsub.f32 %v1714_v60, %v301_v7  ;;  %v305_v20 = vmul.f32 %v301_v7, %v301_v7 }
 0x516   :  { %v314_v12 = vsub.f32 %v275_v61, %v300_v9  ;;  %v304_v15 = vmul.f32 %v300_v9, %v300_v9 }
 0x517   :  { %v296_v14 = vpop.xlane.xlu1 %295 }
 0x518   :  { %v302_v16 = vmul.f32 0.03125, %v296_v14 }
 0x51a   :  { %v306_v17 = vsub.f32 %v302_v16, %v304_v15 }
 0x51b   :  { %v299_v18 = vpop.xlane.xlu1 %298 }
 0x51c   :  { %v308_v21 = vadd.f32 1e-05, %v306_v17  ;;  %v303_v23 = vmul.f32 0.03125, %v299_v18 }
 0x51e   :  { %2154 = vrsqrt.f32 %v308_v21  ;;  %v307_v25 = vsub.f32 %v303_v23, %v305_v20 }
 0x51f   :  { %v330_v32 = vpop.permute.xlu1 %329 }
 0x520   :  { %v309_v26 = vadd.f32 1e-05, %v307_v25 }
 0x522   :  { %2156 = vrsqrt.f32 %v309_v26 }
 0x528   :  { %v2155_v28 = vpop.eup %2154 }
 0x529   :  { %v312_v29 = vmul.f32 %v2155_v28, %v192_v52 }
 0x52b   :  { %318 = vperm.xlu1 %1952, %v312_v29  }
 0x52c   :  { %v2157_v30 = vpop.eup %2156 }
 0x52d   :  { %v313_v31 = vmul.f32 %v2157_v30, %v193_v59 }
 0x52f   :  { %323 = vperm.xlu0 %1950, %v313_v31   ;;  %1953 = vset.pattern.permute.xlu1 %v2259_v37 }
 0x530   :  { %333 = vperm.xlu1 %1953, %v193_v59  }
 0x533   :  { %1965 = vset.pattern.permute.xlu0 %v2260_v5 }
 0x534   :  { %1964 = vset.pattern.permute.xlu1 %v2260_v5 }
 0x5aa   :  { %v319_v33 = vpop.permute.xlu1 %318 }
 0x5ab   :  { %v326_v34 = vmul.f32 %v319_v33, %v314_v12 }
 0x5ad   :  { %v336_v35 = vadd.f32 %v330_v32, %v326_v34  ;;  %v2261_v32 = vmov 50  }
 0x5ae   :  { %v324_v38 = vpop.permute.xlu0 %323 }
 0x5af   :  { %v327_v39 = vmul.f32 %v324_v38, %v315_v11  ;;  %v334_v40 = vpop.permute.xlu1 %333  ;;  %v338_v41 = vmax.f32 %v336_v35, 0.0 }
 0x5b1   :  { %v337_v42 = vadd.f32 %v334_v40, %v327_v39  ;;  %v340_v44 = vmul.f32 %v338_v41, %v2339_v13 }
 0x5b3   :  { %v339_v43 = vmax.f32 %v337_v42, 0.0 }
 0x5b5   :  { %v341_v45 = vmul.f32 %v339_v43, %v2339_v13 }
 0x5b7   :  { %v1959_v46 = vpack.i.bf16 %v341_v45, %v340_v44  ;;  %v1818_v47 = vpack.c.bf16 %v341_v45, %v340_v44 }
 0x5b9   :  { %1960 = vrot.lane.b32.xlu1 %v1959_v46, %s2256_s10  ;;  %1955 = vrot.lane.b32.xlu0 %v1959_v46, %s2255_s2 }
 0x62b   :  { %v1956_v49 = vpop.permute.xlu0 %1955  ;;  %v1961_v53 = vpop.permute.xlu1 %1960 }
 0x62c   :  { %v1958_v50 = vunpack.i.h.bf16 %v1956_v49  ;;  %v1957_v51 = vunpack.i.l.bf16 %v1956_v49  ;;  %v1963_v55 = vunpack.i.h.bf16 %v1961_v53  ;;  %v1962_v56 = vunpack.i.l.bf16 %v1961_v53 }
 0x62e   :  { %v1812_v54 = vpack.c.bf16 %v1958_v50, %v1957_v51  ;;  %v1822_v57 = vpack.c.bf16 %v1963_v55, %v1962_v56 }
 0x630   :  { %1814 = vmatprep.subr.msk.bf16.mxu0 %vm2408_vm11, %v1812_v54 }
 0x631   :  { %1817 = vmatpush3.bf16.msk.msra.mxu0 %vm2408_vm11, %v1812_v54 }
 0x632   :  { %1819 = vmatprep.subr.bf16.mxu0 %v1818_v47 }
 0x635   :  { %1821 = vmatpush3.bf16.msra.mxu0 %v1818_v47 }
 0x636   :  { %1824 = vmatprep.subr.msk.bf16.mxu0 %vm2418_vm12, %v1822_v57 }
 0x639   :  { %1827 = vmatpush3.bf16.msk.msra.mxu0 %vm2418_vm12, %v1822_v57 }
 0x63a   :  { %1727 = vmatprep.subr.msk.mxu0 %vm87_vm6, %v2339_v13 }
 0x63d   :  { %1728 = vmatpush3.msk.msra.mxu0 %vm87_vm6, %v2339_v13 }
 0x63e   :  { %1730 = vmatmul.mubr.msk.f32.vlgmr.msra.gmra.mrb[2].mxu0 %vm362_vm10, %v343_v58 }
 0x63f   :  { %852 = vmatprep.mubr.f32.mxu0 %v2254_v19 }
 0x711   :  { %v1731_v59 = vpop.f32.mrb[2].mxu0 }
 0x712   :  { %v435_v60 = vpop.f32.mrb[3].mxu0  ;;  %v445_v61 = vmul.f32 %v1731_v59, %v2339_v13 }
 0x713   :  { %v444_v62 = vmul.f32 %v435_v60, %v2339_v13 }
 0x714   :  { %v449_v63 = vsel %vm2676_vm9, %v445_v61, 0.0  ;;  %v453_v0 = vmul.f32 %v1731_v59, %v445_v61 }
 0x715   :  { %450 = vadd.xlane.f32.xlu0 %v449_v63  ;;  %v446_v1 = vsel %vm2676_vm9, %v444_v62, 0.0  ;;  %v452_v3 = vmul.f32 %v444_v62, %v435_v60 }
 0x716   :  { %447 = vadd.xlane.f32.xlu1 %v446_v1  ;;  %v457_v2 = vsel %vm2676_vm9, %v453_v0, 0.0  ;;  %v673_v0 = vld [vmem:[#allocation5 + $0x170] sm:$0xff]  ;;  %v674_v1 = vld [vmem:[#allocation5 + $0x180] sm:$0xff] }
 0x717   :  { %v454_v4 = vsel %vm2676_vm9, %v452_v3, 0.0  ;;  %vm578_vm9 = vcmask 916480  }
 0x719   :  { %458 = vadd.xlane.f32.xlu0 %v457_v2 }
 0x71d   :  { %455 = vadd.xlane.f32.xlu0 %v454_v4 }
 0x7a2   :  { %v451_v6 = vpop.xlane.xlu0 %450 }
 0x7a3   :  { %v461_v7 = vmul.f32 0.03125, %v451_v6  ;;  %v448_v8 = vpop.xlane.xlu1 %447 }
 0x7a4   :  { %v460_v9 = vmul.f32 0.03125, %v448_v8  ;;  %v658_v8 = vld [vmem:[#allocation5 + $0x80] sm:$0xff] }
 0x7a5   :  { %v475_v11 = vsub.f32 %v1731_v59, %v461_v7  ;;  %v465_v15 = vmul.f32 %v461_v7, %v461_v7  ;;  %v657_v7 = vld [vmem:[#allocation5 + $0x70] sm:$0xff] }
 0x7a6   :  { %v459_v12 = vpop.xlane.xlu0 %458  ;;  %v474_v14 = vsub.f32 %v435_v60, %v460_v9  ;;  %v464_v20 = vmul.f32 %v460_v9, %v460_v9 }
 0x7a7   :  { %v463_v16 = vmul.f32 0.03125, %v459_v12  ;;  %v676_v12 = vld [vmem:[#allocation5 + $0x1a0] sm:$0xff] }
 0x7a9   :  { %v467_v17 = vsub.f32 %v463_v16, %v465_v15  ;;  %v659_v15 = vld [vmem:[#allocation5 + $0x90] sm:$0xff]  ;;  %v660_v16 = vld [vmem:[#allocation5 + $0xa0] sm:$0xff] }
 0x7aa   :  { %v456_v18 = vpop.xlane.xlu0 %455 }
 0x7ab   :  { %v469_v21 = vadd.f32 1e-05, %v467_v17  ;;  %v462_v23 = vmul.f32 0.03125, %v456_v18  ;;  %v1830_v17 = vpack.c.bf16 %v658_v8, %v657_v7 }
 0x7ad   :  { %2158 = vrsqrt.f32 %v469_v21  ;;  %v466_v25 = vsub.f32 %v462_v23, %v464_v20  ;;  %v677_v20 = vld [vmem:[#allocation5 + $0x1b0] sm:$0xff]  ;;  %v678_v21 = vld [vmem:[#allocation5 + $0x1c0] sm:$0xff]  ;;  %v1834_v23 = vpack.c.bf16 %v660_v16, %v659_v15 }
 0x7af   :  { %v468_v26 = vadd.f32 1e-05, %v466_v25  ;;  %v1836_v25 = vpack.c.bf16 %v678_v21, %v677_v20 }
 0x7b1   :  { %2160 = vrsqrt.f32 %v468_v26  ;;  %v661_v26 = vld [vmem:[#allocation5 + $0xb0] sm:$0xff] }
 0x7b7   :  { %v2159_v28 = vpop.eup %2158 }
 0x7b8   :  { %v473_v29 = vmul.f32 %v2159_v28, %v343_v58  ;;  %v662_v28 = vld [vmem:[#allocation5 + $0xc0] sm:$0xff] }
 0x7ba   :  { %483 = vperm.xlu1 %1964, %v473_v29   ;;  %v679_v29 = vld [vmem:[#allocation5 + $0x1d0] sm:$0xff] }
 0x7bb   :  { %v2161_v30 = vpop.eup %2160 }
 0x7bc   :  { %v472_v31 = vmul.f32 %v2161_v30, %v2401_v48  ;;  %v680_v30 = vld [vmem:[#allocation5 + $0x1e0] sm:$0xff] }
 0x7be   :  { %1966 = vset.pattern.permute.xlu1 %v2261_v32  ;;  %478 = vperm.xlu0 %1965, %v472_v31   ;;  %v1838_v31 = vpack.c.bf16 %v662_v28, %v661_v26 }
 0x7bf   :  { %493 = vperm.xlu1 %1966, %v343_v58  }
 0x7c3   :  { %489 = vperm.xlu1 %1966, %v2401_v48  }
 0x839   :  { %v484_v33 = vpop.permute.xlu1 %483 }
 0x83a   :  { %v487_v34 = vmul.f32 %v484_v33, %v475_v11  ;;  %v675_v11 = vld [vmem:[#allocation5 + $0x190] sm:$0xff]  ;;  %v1840_v33 = vpack.c.bf16 %v680_v30, %v679_v29 }
 0x83b   :  { %v1832_v18 = vpack.c.bf16 %v676_v12, %v675_v11 }
 0x83d   :  { %v479_v35 = vpop.permute.xlu0 %478 }
 0x83e   :  { %v494_v38 = vpop.permute.xlu1 %493  ;;  %v486_v40 = vmul.f32 %v479_v35, %v474_v14  ;;  %v1828_v14 = vpack.c.bf16 %v674_v1, %v673_v0  ;;  %v664_v35 = vld [vmem:[#allocation5 + $0xe0] sm:$0xff] }
 0x83f   :  { %v497_v39 = vadd.f32 %v494_v38, %v487_v34  ;;  %v663_v34 = vld [vmem:[#allocation5 + $0xd0] sm:$0xff] }
 0x840   :  { %1829 = vmatprep.subr.bf16.mxu1 %v1828_v14  ;;  %v681_v38 = vld [vmem:[#allocation5 + $0x1f0] sm:$0xff] }
 0x841   :  { %v499_v41 = vmax.f32 %v497_v39, 0.0  ;;  %1831 = vmatpush3.bf16.msra.mxu1 %v1830_v17  ;;  %v682_v39 = vld [vmem:[#allocation5 + $0x200] sm:$0xff] }
 0x842   :  { %v490_v42 = vpop.permute.xlu1 %489  ;;  %1833 = vmatprep.subr.bf16.mxu1 %v1832_v18 }
 0x843   :  { %v501_v43 = vmul.f32 %v499_v41, %v2339_v13  ;;  %v496_v44 = vadd.f32 %v490_v42, %v486_v40  ;;  %v1842_v40 = vpack.c.bf16 %v664_v35, %v663_v34  ;;  %v1844_v41 = vpack.c.bf16 %v682_v39, %v681_v38  ;;  %v665_v42 = vld [vmem:[#allocation5 + $0xf0] sm:$0xff] }
 0x845   :  { %v498_v45 = vmax.f32 %v496_v44, 0.0  ;;  %v546_v47 = vrot.slane %v501_v43, 3  ;;  %v550_v49 = vrot.slane %v501_v43, 4  ;;  %v538_v50 = vrot.slane %v501_v43, 1  ;;  %1835 = vmatpush3.bf16.msra.mxu1 %v1834_v23  ;;  %v683_v44 = vld [vmem:[#allocation5 + $0x210] sm:$0xff] }
 0x846   :  { %v554_v51 = vrot.slane %v501_v43, 5  ;;  %v542_v53 = vrot.slane %v501_v43, 2  ;;  %v558_v48 = vrot.slane %v501_v43, 6  ;;  %v562_v54 = vrot.slane %v501_v43, 7  ;;  %1837 = vmatprep.subr.bf16.mxu1 %v1836_v25 }
 0x847   :  { %v500_v46 = vmul.f32 %v498_v45, %v2339_v13  ;;  %v684_v45 = vld [vmem:[#allocation5 + $0x220] sm:$0xff] }
 0x849   :  { %v1967_v55 = vpack.i.bf16 %v500_v46, %v501_v43  ;;  %v514_v56 = vrot.slane %v500_v46, 3  ;;  %v518_v57 = vrot.slane %v500_v46, 4  ;;  %v506_v58 = vrot.slane %v500_v46, 1  ;;  %1839 = vmatpush3.bf16.msra.mxu1 %v1838_v31  ;;  %v666_v43 = vld [vmem:[#allocation5 + $0x100] sm:$0xff] }
 0x84a   :  { %v522_v59 = vrot.slane %v500_v46, 5  ;;  %v510_v60 = vrot.slane %v500_v46, 2  ;;  %v526_v61 = vrot.slane %v500_v46, 6  ;;  %v530_v63 = vrot.slane %v500_v46, 7  ;;  %1841 = vmatprep.subr.bf16.mxu1 %v1840_v33 }
 0x84b   :  { %1968 = vrot.lane.b32.xlu1 %v1967_v55, %s2262_s11  ;;  %v2446_v62 = vpack.i.bf16 %v514_v56, %v546_v47  ;;  %v2448_v13 = vpack.i.bf16 %v518_v57, %v550_v49  ;;  %v1977_v2 = vpack.i.bf16 %v506_v58, %v538_v50  ;;  %v1846_v46 = vpack.c.bf16 %v666_v43, %v665_v42  ;;  %v667_v49 = vld [vmem:[#allocation5 + $0x110] sm:$0xff]  ;;  %v668_v50 = vld [vmem:[#allocation5 + $0x120] sm:$0xff] }
 0x84c   :  { %v2450_v3 = vpack.i.bf16 %v522_v59, %v554_v51  ;;  %v1982_v4 = vpack.i.bf16 %v510_v60, %v542_v53  ;;  %v2452_v6 = vpack.i.bf16 %v526_v61, %v558_v48  ;;  %v2032_v9 = vpack.i.bf16 %v530_v63, %v562_v54  ;;  %v685_v51 = vld [vmem:[#allocation5 + $0x230] sm:$0xff]  ;;  %v686_v53 = vld [vmem:[#allocation5 + $0x240] sm:$0xff] }
 0x84d   :  { %1993 = vrot.lane.b32.xlu0 %v2446_v62, %s2263_s12  ;;  %1843 = vmatpush3.bf16.msra.mxu1 %v1842_v40  ;;  %v1848_v47 = vpack.c.bf16 %v684_v45, %v683_v44  ;;  %v1850_v48 = vpack.c.bf16 %v668_v50, %v667_v49  ;;  %v1852_v54 = vpack.c.bf16 %v686_v53, %v685_v51  ;;  %v670_v56 = vld [vmem:[#allocation5 + $0x140] sm:$0xff]  ;;  %v687_v57 = vld [vmem:[#allocation5 + $0x250] sm:$0xff] }
 0x84e   :  { %1845 = vmatprep.subr.bf16.mxu1 %v1844_v41  ;;  %v688_v58 = vld [vmem:[#allocation5 + $0x260] sm:$0xff]  ;;  %v671_v61 = vld [vmem:[#allocation5 + $0x150] sm:$0xff] }
 0x84f   :  { %1973 = vrot.lane.b32.xlu1 %v1967_v55, %s2256_s10  ;;  %v669_v55 = vld [vmem:[#allocation5 + $0x130] sm:$0xff]  ;;  %v1856_v60 = vpack.c.bf16 %v688_v58, %v687_v57  ;;  %v672_v63 = vld [vmem:[#allocation5 + $0x160] sm:$0xff] }
 0x850   :  { %v1854_v59 = vpack.c.bf16 %v670_v56, %v669_v55  ;;  %v1858_v0 = vpack.c.bf16 %v672_v63, %v671_v61 }
 0x851   :  { %2003 = vrot.lane.b32.xlu0 %v2448_v13, %s2264_s13  ;;  %1847 = vmatpush3.bf16.msra.mxu1 %v1846_v46 }
 0x852   :  { %1849 = vmatprep.subr.bf16.mxu1 %v1848_v47 }
 0x853   :  { %1978 = vrot.lane.b32.xlu1 %v1977_v2, %s2265_s14 }
 0x855   :  { %2013 = vrot.lane.b32.xlu0 %v2450_v3, %s2266_s15  ;;  %1851 = vmatpush3.bf16.msra.mxu1 %v1850_v48 }
 0x856   :  { %1853 = vmatprep.subr.bf16.mxu1 %v1852_v54 }
 0x857   :  { %1983 = vrot.lane.b32.xlu1 %v1982_v4, %s2267_s16 }
 0x859   :  { %2023 = vrot.lane.b32.xlu0 %v2452_v6, %s2268_s17  ;;  %1855 = vmatpush3.bf16.msra.mxu1 %v1854_v59 }
 0x85a   :  { %1857 = vmatprep.subr.bf16.mxu1 %v1856_v60 }
 0x85b   :  { %1988 = vrot.lane.b32.xlu1 %v1977_v2, %s2269_s18 }
 0x85d   :  { %2033 = vrot.lane.b32.xlu0 %v2032_v9, %s2270_s19  ;;  %1859 = vmatpush3.bf16.msra.mxu1 %v1858_v0 }
 0x85e   :  { %1889 = vmatprep.subr.bf16.mxu1 %v2252_v10 }
 0x85f   :  { %1998 = vrot.lane.b32.xlu1 %v1982_v4, %s2271_s20 }
 0x861   :  { %2043 = vrot.lane.b32.xlu0 %v2032_v9, %s2272_s21 }
 0x863   :  { %2008 = vrot.lane.b32.xlu1 %v2446_v62, %s2273_s22 }
 0x867   :  { %2018 = vrot.lane.b32.xlu1 %v2448_v13, %s2274_s23 }
 0x86b   :  { %2028 = vrot.lane.b32.xlu1 %v2450_v3, %s2275_s24 }
 0x86f   :  { %2038 = vrot.lane.b32.xlu1 %v2452_v6, %s2276_s25 }
 0x8bd   :  { %v1969_v62 = vpop.permute.xlu1 %1968 }
 0x8be   :  { %v1971_v3 = vunpack.i.h.bf16 %v1969_v62  ;;  %v1970_v16 = vunpack.i.l.bf16 %v1969_v62 }
 0x8bf   :  { %v1994_v2 = vpop.permute.xlu0 %1993 }
 0x8c0   :  { %v1996_v23 = vunpack.i.h.bf16 %v1994_v2  ;;  %v1995_v25 = vunpack.i.l.bf16 %v1994_v2 }
 0x8c1   :  { %v1974_v1 = vpop.permute.xlu1 %1973 }
 0x8c2   :  { %v1976_v41 = vunpack.i.h.bf16 %v1974_v1  ;;  %v1975_v42 = vunpack.i.l.bf16 %v1974_v1 }
 0x8c3   :  { %v2004_v7 = vpop.permute.xlu0 %2003 }
 0x8c4   :  { %v2006_v31 = vunpack.i.h.bf16 %v2004_v7  ;;  %v2005_v33 = vunpack.i.l.bf16 %v2004_v7 }
 0x8c5   :  { %v1979_v4 = vpop.permute.xlu1 %1978 }
 0x8c6   :  { %v1981_v9 = vunpack.i.h.bf16 %v1979_v4  ;;  %v1980_v13 = vunpack.i.l.bf16 %v1979_v4 }
 0x8c7   :  { %v2014_v12 = vpop.permute.xlu0 %2013 }
 0x8c8   :  { %v635_v17 = vsel %vm566_vm13, %v1971_v3, %v1981_v9  ;;  %v642_v6 = vsel %vm566_vm13, %v1970_v16, %v1980_v13  ;;  %v2016_v38 = vunpack.i.h.bf16 %v2014_v12  ;;  %v2015_v39 = vunpack.i.l.bf16 %v2014_v12 }
 0x8c9   :  { %v1984_v8 = vpop.permute.xlu1 %1983 }
 0x8ca   :  { %v1986_v14 = vunpack.i.h.bf16 %v1984_v8  ;;  %v1985_v15 = vunpack.i.l.bf16 %v1984_v8 }
 0x8cb   :  { %v2024_v26 = vpop.permute.xlu0 %2023 }
 0x8cc   :  { %v636_v20 = vsel %vm2679_vm14, %v635_v17, %v1986_v14  ;;  %v643_v21 = vsel %vm2679_vm14, %v642_v6, %v1985_v15  ;;  %v2026_v49 = vunpack.i.h.bf16 %v2024_v26  ;;  %v2025_v50 = vunpack.i.l.bf16 %v2024_v26 }
 0x8cd   :  { %v1989_v11 = vpop.permute.xlu1 %1988  ;;  %v637_v28 = vsel %vm2678_vm15, %v636_v20, %v1996_v23  ;;  %v644_v29 = vsel %vm2678_vm15, %v643_v21, %v1995_v25 }
 0x8ce   :  { %v638_v34 = vsel %vm2677_vm2, %v637_v28, %v2006_v31  ;;  %v645_v35 = vsel %vm2677_vm2, %v644_v29, %v2005_v33  ;;  %v1991_v46 = vunpack.i.h.bf16 %v1989_v11  ;;  %v1990_v47 = vunpack.i.l.bf16 %v1989_v11  ;;  %v773_v33 = vld [vmem:[#allocation5 + $0x288] sm:$0xff] }
 0x8cf   :  { %v2034_v43 = vpop.permute.xlu0 %2033  ;;  %v639_v44 = vsel %vm574_vm3, %v638_v34, %v2016_v38  ;;  %v646_v45 = vsel %vm574_vm3, %v645_v35, %v2015_v39  ;;  %788 = vmatprep.subr.mxu0 %v773_v33  ;;  %v1579_v35 = vld [vmem:[#allocation5 + $0x270] ss:$0 sm:$0xff] }
 0x8d0   :  { %v2036_v48 = vunpack.i.h.bf16 %v2034_v43  ;;  %v2035_v54 = vunpack.i.l.bf16 %v2034_v43  ;;  %v640_v58 = vsel %vm576_vm8, %v639_v44, %v2026_v49  ;;  %v647_v59 = vsel %vm576_vm8, %v646_v45, %v2025_v50  ;;  %v43_v44 = vld [vmem:[%s2672_s1] sm:$0x3]  ;;  %v1580_v49 = vld [vmem:[#allocation5 + $0x290] ss:$0 sm:$0xff]  ;;  %v1581_v50 = vld [vmem:[#allocation5 + $0x298] ss:$0 sm:$0xff] }
 0x8d1   :  { %v1999_v18 = vpop.permute.xlu1 %1998  ;;  %v567_v63 = vsel %vm566_vm13, %v1976_v41, %v1991_v46  ;;  %v580_v0 = vsel %vm566_vm13, %v1975_v42, %v1990_v47  ;;  %v772_v42 = vld [vmem:[#allocation5 + $0x280] sm:$0xff]  ;;  %s2278_s1 = smov 112  }
 0x8d2   :  { %v2001_v51 = vunpack.i.h.bf16 %v1999_v18  ;;  %v2000_v53 = vunpack.i.l.bf16 %v1999_v18  ;;  %v641_v8 = vsel %vm578_vm9, %v640_v58, %v2036_v48  ;;  %v648_v9 = vsel %vm578_vm9, %v647_v59, %v2035_v54  ;;  %789 = vmatpush1.msra.mxu0 %v772_v42 }
 0x8d3   :  { %v2044_v7 = vpop.permute.xlu0 %2043  ;;  %v651_v21 = vrot.slane %v641_v8, 7  ;;  %v652_v26 = vrot.slane %v648_v9, 7 }
 0x8d4   :  { %v569_v2 = vsel %vm2679_vm14, %v567_v63, %v2001_v51  ;;  %v581_v4 = vsel %vm2679_vm14, %v580_v0, %v2000_v53  ;;  %v2046_v17 = vunpack.i.h.bf16 %v2044_v7  ;;  %v2045_v6 = vunpack.i.l.bf16 %v2044_v7 }
 0x8d5   :  { %v2009_v30 = vpop.permute.xlu1 %2008  ;;  %vm928_vm14 = vcmask 1046528  }
 0x8d6   :  { %v2011_v55 = vunpack.i.h.bf16 %v2009_v30  ;;  %v2010_v56 = vunpack.i.l.bf16 %v2009_v30 }
 0x8d8   :  { %v571_v13 = vsel %vm2678_vm15, %v569_v2, %v2011_v55  ;;  %v582_v11 = vsel %vm2678_vm15, %v581_v4, %v2010_v56  ;;  %vm926_vm15 = vcmask 1045504  }
 0x8d9   :  { %v2019_v40 = vpop.permute.xlu1 %2018 }
 0x8da   :  { %v2021_v60 = vunpack.i.h.bf16 %v2019_v40  ;;  %v2020_v61 = vunpack.i.l.bf16 %v2019_v40 }
 0x8dc   :  { %v573_v14 = vsel %vm2677_vm2, %v571_v13, %v2021_v60  ;;  %v583_v15 = vsel %vm2677_vm2, %v582_v11, %v2020_v61  ;;  %vm924_vm2 = vcmask 1044480  }
 0x8dd   :  { %v2029_v57 = vpop.permute.xlu1 %2028 }
 0x8de   :  { %v2031_v62 = vunpack.i.h.bf16 %v2029_v57  ;;  %v2030_v1 = vunpack.i.l.bf16 %v2029_v57 }
 0x8e0   :  { %v575_v18 = vsel %vm574_vm3, %v573_v14, %v2031_v62  ;;  %v584_v20 = vsel %vm574_vm3, %v583_v15, %v2030_v1  ;;  %vm920_vm3 = vcmask 1042432  }
 0x8e1   :  { %v2039_v12 = vpop.permute.xlu1 %2038 }
 0x8e2   :  { %v2041_v3 = vunpack.i.h.bf16 %v2039_v12  ;;  %v2040_v16 = vunpack.i.l.bf16 %v2039_v12 }
 0x8e4   :  { %v577_v23 = vsel %vm576_vm8, %v575_v18, %v2041_v3  ;;  %v585_v25 = vsel %vm576_vm8, %v584_v20, %v2040_v16  ;;  %vm784_vm8 = vcmask 64512  }
 0x8e5   :  { %v586_v28 = vsel %vm578_vm9, %v585_v25, %v2045_v6  ;;  %v579_v29 = vsel %vm578_vm9, %v577_v23, %v2046_v17  ;;  %vm918_vm9 = vcmask 1041408  }
 0x8e6   :  { %v656_v30 = vsel %vm87_vm6, %v586_v28, %v652_v26  ;;  %v655_v31 = vsel %vm87_vm6, %v579_v29, %v651_v21 }
 0x8e7   :  { %758 = vmatprep.mubr.f32.mxu1 %v656_v30 }
 0x8e8   :  { %759 = vmatmul.mubr.f32.vlgmr.msra.gmra.mrb[2].mxu1 %v655_v31 }
 0x8e9   :  { %1774 = vmatprep.mubr.msk.f32.mxu1 %vm2253_vm0, %v2254_v19 }
 0x9bb   :  { %v1661_v34 = vpop.f32.mrb[2].mxu1 }
 0x9bc   :  { %v1662_v38 = vpop.f32.mrb[3].mxu1 }
 0x9bd   :  { %v1663_v39 = vadd.f32 %v1662_v38, %v1661_v34 }
 0x9bf   :  { %v2500_v40 = vadd.f32 %v1663_v39, %v1579_v35 }
 0x9c1   :  { %v764_v41 = vmul.f32 1.442695, %v2500_v40 }
 0x9c3   :  { %2162 = vpow2.f32 %v764_v41 }
 0x9cd   :  { %v2163_v43 = vpop.eup %2162 }
 0x9ce   :  { %767 = vrot.lane.b32.xlu1 %v2163_v43, %s2277_s26 }
 0xa40   :  { %v768_v45 = vpop.permute.xlu1 %767 }
 0xa41   :  { %v770_v46 = vmul.f32 %v768_v45, %v43_v44 }
 0xa43   :  { %v2507_v47 = vadd.f32 %v770_v46, %v2500_v40 }
 0xa45   :  { %1582 = vmatmul.mubr.msk.f32.vlgmr.msra.gmra.mrb[4].mxu0 %vm784_vm8, %v2507_v47  ;;  %vm922_vm8 = vcmask 1043456  }
 0xb18   :  { %v854_v51 = vpop.f32.mrb[4].mxu0 }
 0xb19   :  { %v2510_v53 = vadd.f32 %v1580_v49, %v854_v51  ;;  %v856_v48 = vpop.f32.mrb[5].mxu0 }
 0xb1a   :  { %v2512_v54 = vadd.f32 %v1581_v50, %v856_v48 }
 0xb1b   :  { %v864_v55 = vrot.slane %v2510_v53, 6  ;;  %v860_v58 = vrot.slane %v2510_v53, 7  ;;  %v872_v61 = vrot.slane %v2510_v53, 4  ;;  %v868_v62 = vrot.slane %v2510_v53, 5 }
 0xb1c   :  { %v2047_v56 = vpack.i.bf16 %v2512_v54, %v2510_v53  ;;  %v893_v57 = vrot.slane %v2512_v54, 6  ;;  %v889_v59 = vrot.slane %v2512_v54, 7  ;;  %v901_v63 = vrot.slane %v2512_v54, 4 }
 0xb1d   :  { %v897_v1 = vrot.slane %v2512_v54, 5  ;;  %v876_v4 = vrot.slane %v2510_v53, 3  ;;  %v905_v7 = vrot.slane %v2512_v54, 3  ;;  %v880_v13 = vrot.slane %v2510_v53, 2 }
 0xb1e   :  { %2048 = vrot.lane.b32.xlu0 %v2047_v56, %s2278_s1  ;;  %v2057_v60 = vpack.i.bf16 %v893_v57, %v864_v55  ;;  %v2052_v0 = vpack.i.bf16 %v889_v59, %v860_v58  ;;  %v2067_v2 = vpack.i.bf16 %v901_v63, %v872_v61  ;;  %v909_v11 = vrot.slane %v2512_v54, 2 }
 0xb1f   :  { %v2062_v8 = vpack.i.bf16 %v897_v1, %v868_v62  ;;  %v2072_v9 = vpack.i.bf16 %v905_v7, %v876_v4  ;;  %v884_v14 = vrot.slane %v2510_v53, 1  ;;  %v913_v15 = vrot.slane %v2512_v54, 1 }
 0xb20   :  { %2058 = vrot.lane.b32.xlu1 %v2057_v60, %s2279_s29  ;;  %v2082_v12 = vpack.i.bf16 %v909_v11, %v880_v13 }
 0xb21   :  { %v2092_v3 = vpack.i.bf16 %v913_v15, %v884_v14 }
 0xb22   :  { %2053 = vrot.lane.b32.xlu0 %v2052_v0, %s2278_s1 }
 0xb24   :  { %2068 = vrot.lane.b32.xlu1 %v2067_v2, %s2280_s30 }
 0xb26   :  { %2063 = vrot.lane.b32.xlu0 %v2062_v8, %s2281_s4 }
 0xb28   :  { %2073 = vrot.lane.b32.xlu1 %v2072_v9, %s2282_s5 }
 0xb2a   :  { %2078 = vrot.lane.b32.xlu0 %v2052_v0, %s2279_s29 }
 0xb2c   :  { %2083 = vrot.lane.b32.xlu1 %v2082_v12, %s2283_s6 }
 0xb2e   :  { %2088 = vrot.lane.b32.xlu0 %v2057_v60, %s2281_s4 }
 0xb30   :  { %2093 = vrot.lane.b32.xlu1 %v2092_v3, %s2248_s7 }
 0xb32   :  { %2098 = vrot.lane.b32.xlu0 %v2062_v8, %s2280_s30 }
 0xb34   :  { %2103 = vrot.lane.b32.xlu1 %v2067_v2, %s2282_s5 }
 0xb36   :  { %2108 = vrot.lane.b32.xlu0 %v2072_v9, %s2283_s6 }
 0xb38   :  { %2113 = vrot.lane.b32.xlu1 %v2082_v12, %s2248_s7  ;;  %s2285_s7 = smov [#allocation7]  }
 0xb39   :  { %s1549_s8 = sshll.u32 %s2285_s7, 4  ;;  %s1550_s8 = int_to_ptr.vmem [resolvable:$true] %s1549_s8 }
 0xb3a   :  { %s2217_s9 = scalar_lea.vmem %s1550_s8, 32  ;;  %p2222_p3 = scmp.lt.s32.totalorder %s1550_s8, %s1550_s8 }
 0xb3b   :  { %p2218_p2 = scmp.ne.s32.totalorder %s1550_s8, %s2217_s9  ;;  %p2223_p4 = scmp.lt.s32.totalorder %s2217_s9, %s2217_s9 }
 0xb3d   :  { %p2224_p5 = por %p2223_p4, %p2222_p3 }
 0xb3f   :  { %p2225_p6 = pnand %p2224_p5, %p2218_p2 }
 0xb90   :  { %v2049_v16 = vpop.permute.xlu0 %2048 }
 0xb91   :  { %v2051_v44 = vunpack.i.h.bf16 %v2049_v16  ;;  %v2050_v45 = vunpack.i.l.bf16 %v2049_v16 }
 0xb92   :  { %v2059_v17 = vpop.permute.xlu1 %2058 }
 0xb93   :  { %v2061_v28 = vunpack.i.h.bf16 %v2059_v17  ;;  %v2060_v29 = vunpack.i.l.bf16 %v2059_v17  ;;  %v988_v58 = vsel %vm87_vm6, %v913_v15, %v2051_v44  ;;  %v981_v59 = vsel %vm87_vm6, %v884_v14, %v2050_v45 }
 0xb94   :  { %v2054_v6 = vpop.permute.xlu0 %2053 }
 0xb95   :  { %v2056_v18 = vunpack.i.h.bf16 %v2054_v6  ;;  %v2055_v20 = vunpack.i.l.bf16 %v2054_v6 }
 0xb96   :  { %v2069_v21 = vpop.permute.xlu1 %2068 }
 0xb97   :  { %v930_v23 = vsel %vm87_vm6, %v2512_v54, %v2056_v18  ;;  %v917_v25 = vsel %vm87_vm6, %v2510_v53, %v2055_v20  ;;  %v2071_v42 = vunpack.i.h.bf16 %v2069_v21  ;;  %v2070_v43 = vunpack.i.l.bf16 %v2069_v21 }
 0xb98   :  { %v2064_v26 = vpop.permute.xlu0 %2063  ;;  %v919_v34 = vsel %vm918_vm9, %v917_v25, %v2060_v29  ;;  %v931_v35 = vsel %vm918_vm9, %v930_v23, %v2061_v28 }
 0xb99   :  { %v2066_v30 = vunpack.i.h.bf16 %v2064_v26  ;;  %v2065_v31 = vunpack.i.l.bf16 %v2064_v26 }
 0xb9a   :  { %v2074_v33 = vpop.permute.xlu1 %2073 }
 0xb9b   :  { %v921_v38 = vsel %vm920_vm3, %v919_v34, %v2065_v31  ;;  %v932_v39 = vsel %vm920_vm3, %v931_v35, %v2066_v30  ;;  %v2076_v49 = vunpack.i.h.bf16 %v2074_v33  ;;  %v2075_v50 = vunpack.i.l.bf16 %v2074_v33 }
 0xb9c   :  { %v2079_v41 = vpop.permute.xlu0 %2078  ;;  %v923_v51 = vsel %vm922_vm8, %v921_v38, %v2070_v43  ;;  %v933_v53 = vsel %vm922_vm8, %v932_v39, %v2071_v42 }
 0xb9d   :  { %v2081_v48 = vunpack.i.h.bf16 %v2079_v41  ;;  %v2080_v54 = vunpack.i.l.bf16 %v2079_v41  ;;  %v925_v0 = vsel %vm924_vm2, %v923_v51, %v2075_v50  ;;  %v934_v62 = vsel %vm924_vm2, %v933_v53, %v2076_v49 }
 0xb9e   :  { %v2084_v46 = vpop.permute.xlu1 %2083 }
 0xb9f   :  { %v2086_v55 = vunpack.i.h.bf16 %v2084_v46  ;;  %v2085_v56 = vunpack.i.l.bf16 %v2084_v46  ;;  %v989_v4 = vsel %vm918_vm9, %v988_v58, %v2081_v48  ;;  %v982_v7 = vsel %vm918_vm9, %v981_v59, %v2080_v54 }
 0xba0   :  { %v2089_v57 = vpop.permute.xlu0 %2088  ;;  %vm1016_vm9 = vcmask 146432  }
 0xba1   :  { %v2091_v60 = vunpack.i.h.bf16 %v2089_v57  ;;  %v2090_v61 = vunpack.i.l.bf16 %v2089_v57  ;;  %v927_v8 = vsel %vm926_vm15, %v925_v0, %v2085_v56  ;;  %v935_v9 = vsel %vm926_vm15, %v934_v62, %v2086_v55  ;;  %v1024_v0 = vld [vmem:[#allocation5 + $0x2a0] sm:$0xff] }
 0xba2   :  { %v2094_v63 = vpop.permute.xlu1 %2093  ;;  %1746 = vmatprep.mubr.msk.f32.mxu0 %vm362_vm10, %v1024_v0 }
 0xba3   :  { %v2096_v1 = vunpack.i.h.bf16 %v2094_v63  ;;  %v2095_v2 = vunpack.i.l.bf16 %v2094_v63  ;;  %v983_v3 = vsel %vm920_vm3, %v982_v7, %v2090_v61  ;;  %v990_v16 = vsel %vm920_vm3, %v989_v4, %v2091_v60 }
 0xba4   :  { %v2099_v13 = vpop.permute.xlu0 %2098 }
 0xba5   :  { %v2101_v11 = vunpack.i.h.bf16 %v2099_v13  ;;  %v2100_v12 = vunpack.i.l.bf16 %v2099_v13  ;;  %v929_v14 = vsel %vm928_vm14, %v927_v8, %v2095_v2  ;;  %v936_v15 = vsel %vm928_vm14, %v935_v9, %v2096_v1 }
 0xba6   :  { %v2104_v17 = vpop.permute.xlu1 %2103  ;;  %v2117_v6 = vpack.i.bf16 %v936_v15, %v929_v14 }
 0xba7   :  { %v984_v18 = vsel %vm922_vm8, %v983_v3, %v2100_v12  ;;  %v991_v20 = vsel %vm922_vm8, %v990_v16, %v2101_v11  ;;  %v2106_v21 = vunpack.i.h.bf16 %v2104_v17  ;;  %v2105_v23 = vunpack.i.l.bf16 %v2104_v17  ;;  %v2586_v11 = vld [vmem:[#allocation5] ss:$0 sm:$0xff]  ;;  %v1025_v12 = vld [vmem:[#allocation5 + $0x2b0] sm:$0xff] }
 0xba8   :  { %v2109_v25 = vpop.permute.xlu0 %2108  ;;  %2118 = vrot.lane.b32.xlu0 %v2117_v6, %s2255_s2 }
 0xba9   :  { %v985_v26 = vsel %vm924_vm2, %v984_v18, %v2105_v23  ;;  %v992_v28 = vsel %vm924_vm2, %v991_v20, %v2106_v21  ;;  %v2111_v29 = vunpack.i.h.bf16 %v2109_v25  ;;  %v2110_v30 = vunpack.i.l.bf16 %v2109_v25 }
 0xbaa   :  { %v2114_v31 = vpop.permute.xlu1 %2113  ;;  %vm1013_vm2 = vcmask 138240  }
 0xbab   :  { %v986_v33 = vsel %vm926_vm15, %v985_v26, %v2110_v30  ;;  %v993_v34 = vsel %vm926_vm15, %v992_v28, %v2111_v29  ;;  %v2116_v35 = vunpack.i.h.bf16 %v2114_v31  ;;  %v2115_v38 = vunpack.i.l.bf16 %v2114_v31 }
 0xbac   :  { %vm1019_vm15 = vcmask 154624  }
 0xbad   :  { %v987_v39 = vsel %vm928_vm14, %v986_v33, %v2115_v38  ;;  %v994_v41 = vsel %vm928_vm14, %v993_v34, %v2116_v35 }
 0xbae   :  { %v2122_v42 = vpack.i.bf16 %v994_v41, %v987_v39 }
 0xbb0   :  { %2123 = vrot.lane.b32.xlu1 %v2122_v42, %s2284_s0 }
 0xc1a   :  { %v2119_v43 = vpop.permute.xlu0 %2118 }
 0xc1b   :  { %v2121_v44 = vunpack.i.h.bf16 %v2119_v43  ;;  %v2120_v45 = vunpack.i.l.bf16 %v2119_v43 }
 0xc1d   :  { %v1012_v46 = vsel %vm76_vm1, 0.0, %v2121_v44  ;;  %v1011_v49 = vsel %vm76_vm1, 0.0, %v2120_v45  ;;  %vm2690_vm1 = vcmask 293888  }
 0xc1e   :  { %v1015_v50 = vsel %vm1013_vm2, %v1012_v46, 0.0  ;;  %v1014_v51 = vsel %vm1013_vm2, %v1011_v49, 0.0  ;;  %vm2692_vm14 = vmmov %vm2690_vm1  ;;  %vm1538_vm2 = vcmask 457728  }
 0xc1f   :  { %v1018_v55 = vsel %vm1016_vm9, %v1015_v50, 0.0  ;;  %v1017_v56 = vsel %vm1016_vm9, %v1014_v51, 0.0  ;;  %vm2693_vm3 = vmmov %vm2690_vm1 }
 0xc20   :  { %vm2695_vm8 = vmmov %vm2690_vm1 }
 0xc22   :  { %v2124_v53 = vpop.permute.xlu1 %2123 }
 0xc23   :  { %v2126_v48 = vunpack.i.h.bf16 %v2124_v53  ;;  %v2125_v54 = vunpack.i.l.bf16 %v2124_v53 }
 0xc25   :  { %v1020_v57 = vsel %vm1019_vm15, %v1017_v56, %v2125_v54  ;;  %v1021_v58 = vsel %vm1019_vm15, %v1018_v55, %v2126_v48  ;;  %vm1541_vm15 = vcmask 582656  }
 0xc26   :  { %v1022_v59 = vsel %vm81_vm5, %v1020_v57, 0.0  ;;  %v1023_v60 = vsel %vm81_vm5, %v1021_v58, 0.0  ;;  %v1866_v61 = vpack.c.bf16 %v1021_v58, %v1020_v57  ;;  %vm2691_vm5 = vmmov %vm2690_vm1 }
 0xc27   :  { %v2132_v63 = vpack.i.bf16 %v1023_v60, %v1022_v59 }
 0xc29   :  { %2133 = vrot.lane.b32.xlu1 %v2132_v63, %s2256_s10  ;;  %2128 = vrot.lane.b32.xlu0 %v2132_v63, %s2255_s2 }
 0xc9b   :  { %v2129_v62 = vpop.permute.xlu0 %2128  ;;  %v2134_v4 = vpop.permute.xlu1 %2133 }
 0xc9c   :  { %v2131_v1 = vunpack.i.h.bf16 %v2129_v62  ;;  %v2130_v2 = vunpack.i.l.bf16 %v2129_v62  ;;  %v2136_v8 = vunpack.i.h.bf16 %v2134_v4  ;;  %v2135_v9 = vunpack.i.l.bf16 %v2134_v4 }
 0xc9e   :  { %v1860_v7 = vpack.c.bf16 %v2131_v1, %v2130_v2  ;;  %v1872_v13 = vpack.c.bf16 %v2136_v8, %v2135_v9 }
 0xca0   :  { %1862 = vmatprep.subr.msk.bf16.mxu0 %vm2408_vm11, %v1860_v7 }
 0xca1   :  { %1865 = vmatpush3.bf16.msk.msra.mxu0 %vm2408_vm11, %v1860_v7 }
 0xca2   :  { %1868 = vmatprep.subr.msk.bf16.mxu0 %vm2418_vm12, %v1866_v61 }
 0xca5   :  { %1871 = vmatpush3.bf16.msk.msra.mxu0 %vm2418_vm12, %v1866_v61 }
 0xca6   :  { %1874 = vmatprep.subr.msk.bf16.mxu0 %vm2418_vm12, %v1872_v13 }
 0xca9   :  { %1877 = vmatpush3.bf16.msk.msra.mxu0 %vm2418_vm12, %v1872_v13 }
 0xcaa   :  { %1744 = vmatprep.subr.msk.mxu0 %vm87_vm6, %v2586_v11 }
 0xcad   :  { %1745 = vmatpush3.msk.msra.mxu0 %vm87_vm6, %v2586_v11 }
 0xcae   :  { %1747 = vmatmul.mubr.msk.f32.vlgmr.msra.gmra.mrb[6].mxu0 %vm362_vm10, %v1025_v12  ;;  %1878 = vmatprep.subr.bf16.mxu0 %v2252_v10 }
 0xcaf   :  { %1763 = vmatprep.mubr.msk.f32.mxu0 %vm2253_vm0, %v2254_v19 }
 0xd81   :  { %v1748_v14 = vpop.f32.mrb[6].mxu0 }
 0xd82   :  { %v1116_v15 = vpop.f32.mrb[7].mxu0  ;;  %v1126_v3 = vmul.f32 %v2586_v11, %v1748_v14 }
 0xd83   :  { %v1125_v16 = vmul.f32 %v2586_v11, %v1116_v15 }
 0xd84   :  { %v1130_v17 = vsel %vm2690_vm1, %v1126_v3, 0.0  ;;  %v1134_v21 = vmul.f32 %v1748_v14, %v1126_v3 }
 0xd85   :  { %1131 = vadd.xlane.f32.xlu1 %v1130_v17  ;;  %v1127_v6 = vsel %vm2691_vm5, %v1125_v16, 0.0  ;;  %v1133_v18 = vmul.f32 %v1125_v16, %v1116_v15 }
 0xd86   :  { %1128 = vadd.xlane.f32.xlu0 %v1127_v6  ;;  %v1138_v23 = vsel %vm2693_vm3, %v1134_v21, 0.0 }
 0xd87   :  { %v1135_v20 = vsel %vm2692_vm14, %v1133_v18, 0.0 }
 0xd8a   :  { %1136 = vadd.xlane.f32.xlu0 %v1135_v20 }
 0xd8e   :  { %1139 = vadd.xlane.f32.xlu0 %v1138_v23 }
 0xd96   :  { %1170 = vperm.xlu1 %1966, %v1024_v0  }
 0xd9a   :  { %2137 = vset.pattern.permute.xlu1 %v2260_v5 }
 0xe12   :  { %v1132_v25 = vpop.xlane.xlu1 %1131 }
 0xe13   :  { %v1142_v26 = vmul.f32 0.03125, %v1132_v25  ;;  %v1129_v28 = vpop.xlane.xlu0 %1128 }
 0xe14   :  { %v1141_v29 = vmul.f32 0.03125, %v1129_v28 }
 0xe15   :  { %v1156_v30 = vsub.f32 %v1748_v14, %v1142_v26  ;;  %v1146_v41 = vmul.f32 %v1142_v26, %v1142_v26 }
 0xe16   :  { %v1155_v31 = vsub.f32 %v1116_v15, %v1141_v29  ;;  %v1145_v34 = vmul.f32 %v1141_v29, %v1141_v29  ;;  %v1171_v51 = vpop.permute.xlu1 %1170 }
 0xe17   :  { %v1137_v33 = vpop.xlane.xlu0 %1136 }
 0xe18   :  { %v1143_v35 = vmul.f32 0.03125, %v1137_v33 }
 0xe1a   :  { %v1147_v38 = vsub.f32 %v1143_v35, %v1145_v34 }
 0xe1b   :  { %v1140_v39 = vpop.xlane.xlu0 %1139 }
 0xe1c   :  { %v1149_v42 = vadd.f32 1e-05, %v1147_v38  ;;  %v1144_v43 = vmul.f32 0.03125, %v1140_v39 }
 0xe1e   :  { %2164 = vrsqrt.f32 %v1149_v42  ;;  %v1148_v44 = vsub.f32 %v1144_v43, %v1146_v41  ;;  %v1304_v43 = vld [vmem:[#allocation5 + $0x2d0] sm:$0x7] }
 0xe20   :  { %v1150_v45 = vadd.f32 1e-05, %v1148_v44 }
 0xe22   :  { %2166 = vrsqrt.f32 %v1150_v45 }
 0xe28   :  { %v2165_v46 = vpop.eup %2164 }
 0xe29   :  { %v1153_v5 = vmul.f32 %v2165_v46, %v1024_v0 }
 0xe2b   :  { %1159 = vperm.xlu1 %2137, %v1153_v5  }
 0xe2c   :  { %v2167_v49 = vpop.eup %2166 }
 0xe2d   :  { %v1154_v50 = vmul.f32 %v2167_v49, %v1025_v12 }
 0xe2f   :  { %1164 = vperm.xlu0 %1965, %v1154_v50   ;;  %2138 = vset.pattern.permute.xlu1 %v2261_v32 }
 0xe30   :  { %1174 = vperm.xlu1 %2138, %v1025_v12   ;;  %v1183_v12 = vld [vmem:[#allocation5 + $0x2c0] sm:$0xff] }
 0xeaa   :  { %v1160_v53 = vpop.permute.xlu1 %1159 }
 0xeab   :  { %v1167_v48 = vmul.f32 %v1160_v53, %v1155_v31 }
 0xead   :  { %v1177_v54 = vadd.f32 %v1171_v51, %v1167_v48 }
 0xeae   :  { %v1165_v55 = vpop.permute.xlu0 %1164 }
 0xeaf   :  { %v1168_v56 = vmul.f32 %v1165_v55, %v1156_v30  ;;  %v1175_v57 = vpop.permute.xlu1 %1174  ;;  %v1179_v58 = vmax.f32 %v1177_v54, 0.0 }
 0xeb1   :  { %v1178_v59 = vadd.f32 %v1175_v57, %v1168_v56  ;;  %v1181_v61 = vmul.f32 %v2586_v11, %v1179_v58 }
 0xeb3   :  { %v1180_v60 = vmax.f32 %v1178_v59, 0.0 }
 0xeb5   :  { %v1182_v63 = vmul.f32 %v2586_v11, %v1180_v60 }
 0xeb7   :  { %v2144_v0 = vpack.i.bf16 %v1182_v63, %v1181_v61  ;;  %v1883_v62 = vpack.c.bf16 %v1182_v63, %v1181_v61  ;;  %v1446_v63 = vld [vmem:[#allocation5 + $0x2e0] sm:$0xff] }
 0xeb9   :  { %2145 = vrot.lane.b32.xlu1 %v2144_v0, %s2256_s10  ;;  %2140 = vrot.lane.b32.xlu0 %v2144_v0, %s2255_s2  ;;  %v1447_v0 = vld [vmem:[#allocation5 + $0x2f0] sm:$0xff] }
 0xf2b   :  { %v2141_v32 = vpop.permute.xlu0 %2140  ;;  %v2146_v7 = vpop.permute.xlu1 %2145 }
 0xf2c   :  { %v2143_v1 = vunpack.i.h.bf16 %v2141_v32  ;;  %v2142_v2 = vunpack.i.l.bf16 %v2141_v32  ;;  %v2148_v8 = vunpack.i.h.bf16 %v2146_v7  ;;  %v2147_v9 = vunpack.i.l.bf16 %v2146_v7  ;;  %v1451_v7 = vld [vmem:[#allocation5 + $0x330] sm:$0xff] }
 0xf2d   :  { %v1898_v32 = vpack.c.bf16 %v1447_v0, %v1446_v63 }
 0xf2e   :  { %v1879_v4 = vpack.c.bf16 %v2143_v1, %v2142_v2  ;;  %v1886_v13 = vpack.c.bf16 %v2148_v8, %v2147_v9  ;;  %v1448_v2 = vld [vmem:[#allocation5 + $0x300] sm:$0xff] }
 0xf30   :  { %1881 = vmatpush3.bf16.msk.msra.mxu0 %vm2408_vm11, %v1879_v4  ;;  %vm2694_vm11 = vmmov %vm2690_vm1  ;;  %v1449_v4 = vld [vmem:[#allocation5 + $0x310] sm:$0xff] }
 0xf31   :  { %1882 = vmatprep.subr.bf16.mxu0 %v2252_v10 }
 0xf34   :  { %1884 = vmatpush3.bf16.msra.mxu0 %v1883_v62 }
 0xf35   :  { %1885 = vmatprep.subr.bf16.mxu0 %v2252_v10 }
 0xf38   :  { %1888 = vmatpush3.bf16.msk.msra.mxu0 %vm2418_vm12, %v1886_v13  ;;  %vm1388_vm12 = vcmask 288768  }
 0xf39   :  { %1761 = vmatprep.subr.mxu0 %v2254_v19 }
 0xf3c   :  { %1762 = vmatpush3.msk.msra.mxu0 %vm87_vm6, %v2586_v11 }
 0xf3d   :  { %1764 = vmatmul.mubr.msk.f32.vlgmr.msra.gmra.mrb[8].mxu0 %vm362_vm10, %v1183_v12  ;;  %vm2696_vm10 = vcmask 203776  }
0x1010   :  { %v1271_v52 = vpop.f32.mrb[8].mxu0 }
0x1011   :  { %v1765_v14 = vpop.f32.mrb[9].mxu0  ;;  %v1275_v15 = vmul.f32 %v2586_v11, %v1271_v52 }
0x1013   :  { %v1276_v3 = vsel %vm2694_vm11, %v1275_v15, 0.0  ;;  %v1279_v16 = vmul.f32 %v1275_v15, %v1271_v52 }
0x1014   :  { %1277 = vadd.xlane.f32.xlu0 %v1276_v3 }
0x1015   :  { %v1280_v17 = vsel %vm2695_vm8, %v1279_v16, 0.0 }
0x1016   :  { %1281 = vadd.xlane.f32.xlu1 %v1280_v17 }
0x1027   :  { %1298 = vperm.xlu1 %2138, %v1183_v12  }
0x102b   :  { %2150 = vset.pattern.permute.xlu1 %v2259_v37 }
0x10a1   :  { %v1278_v22 = vpop.xlane.xlu0 %1277 }
0x10a2   :  { %v1283_v6 = vmul.f32 0.03125, %v1278_v22 }
0x10a3   :  { %v1282_v18 = vpop.xlane.xlu1 %1281 }
0x10a4   :  { %v1285_v20 = vmul.f32 %v1283_v6, %v1283_v6  ;;  %v1284_v21 = vmul.f32 0.03125, %v1282_v18  ;;  %v1290_v23 = vsub.f32 %v1271_v52, %v1283_v6 }
0x10a6   :  { %v1286_v25 = vsub.f32 %v1284_v21, %v1285_v20 }
0x10a7   :  { %v1299_v33 = vpop.permute.xlu1 %1298 }
0x10a8   :  { %v1287_v26 = vadd.f32 1e-05, %v1286_v25 }
0x10aa   :  { %2168 = vrsqrt.f32 %v1287_v26 }
0x10b4   :  { %v2169_v28 = vpop.eup %2168 }
0x10b5   :  { %v1289_v29 = vmul.f32 %v2169_v28, %v1183_v12 }
0x10b7   :  { %1293 = vperm.xlu0 %1965, %v1289_v29  }
0x10bb   :  { %2149 = vset.pattern.permute.xlu0 %v2258_v36 }
0x1136   :  { %v1294_v30 = vpop.permute.xlu0 %1293 }
0x1137   :  { %v1296_v31 = vmul.f32 %v1294_v30, %v1290_v23 }
0x1139   :  { %v1301_v34 = vadd.f32 %v1299_v33, %v1296_v31 }
0x113b   :  { %v1302_v35 = vmax.f32 %v1301_v34, 0.0 }
0x113d   :  { %v1303_v38 = vmul.f32 %v2586_v11, %v1302_v35 }
0x113f   :  { %1310 = vrot.lane.b32.xlu1 %v1303_v38, %s2256_s10  ;;  %1306 = vrot.lane.b32.xlu0 %v1303_v38, %s2255_s2 }
0x11b1   :  { %v1307_v39 = vpop.permute.xlu0 %1306  ;;  %v1311_v42 = vpop.permute.xlu1 %1310 }
0x11b2   :  { %v1890_v41 = vpack.c.bf16 %v1303_v38, %v1307_v39  ;;  %v1894_v36 = vpack.c.bf16 %v2586_v11, %v1311_v42 }
0x11b4   :  { %1892 = vmatpush3.bf16.msk.msra.mxu1 %vm2353_vm4, %v1890_v41 }
0x11b5   :  { %1893 = vmatprep.subr.bf16.mxu1 %v2252_v10 }
0x11b8   :  { %1896 = vmatpush3.bf16.msk.msra.mxu1 %vm2362_vm7, %v1894_v36  ;;  %vm2699_vm7 = vcmask 392192  }
0x11b9   :  { %1897 = vmatprep.subr.bf16.mxu1 %v2252_v10  ;;  %vm2700_vm9 = vmmov %vm2699_vm7 }
0x11bb   :  { %1775 = vmatmul.mubr.msk.f32.vlgmr.msra.gmra.mrb[4].mxu1 %vm2696_vm10, %v1304_v43 }
0x11bc   :  { %1789 = vmatprep.mubr.msk.f32.mxu1 %vm2253_vm0, %v2254_v19  ;;  %1899 = vmatpush3.bf16.msra.mxu1 %v1898_v32  ;;  %vm2697_vm0 = vcmask 261120  }
0x11bd   :  { %1900 = vmatprep.subr.bf16.mxu1 %v2252_v10  ;;  %vm2698_vm4 = vmmov %vm2697_vm0 }
0x128e   :  { %v1383_v44 = vpop.f32.mrb[4].mxu1 }
0x128f   :  { %v1776_v45 = vpop.f32.mrb[5].mxu1  ;;  %v1387_v24 = vmul.f32 %v2586_v11, %v1383_v44 }
0x1291   :  { %v1389_v46 = vsel %vm1388_vm12, %v1387_v24, 0.0  ;;  %v1392_v5 = vmul.f32 %v1387_v24, %v1383_v44 }
0x1292   :  { %1390 = vadd.xlane.f32.xlu0 %v1389_v46 }
0x1293   :  { %v1393_v49 = vsel %vm1388_vm12, %v1392_v5, 0.0 }
0x1294   :  { %1394 = vadd.xlane.f32.xlu1 %v1393_v49 }
0x12a5   :  { %1411 = vperm.xlu1 %2150, %v1304_v43  }
0x131f   :  { %v1391_v27 = vpop.xlane.xlu0 %1390 }
0x1320   :  { %v1396_v50 = vmul.f32 0.03125, %v1391_v27 }
0x1321   :  { %v1395_v51 = vpop.xlane.xlu1 %1394 }
0x1322   :  { %v1398_v53 = vmul.f32 %v1396_v50, %v1396_v50  ;;  %v1397_v48 = vmul.f32 0.03125, %v1395_v51  ;;  %v1403_v54 = vsub.f32 %v1383_v44, %v1396_v50 }
0x1324   :  { %v1399_v55 = vsub.f32 %v1397_v48, %v1398_v53 }
0x1325   :  { %v1412_v59 = vpop.permute.xlu1 %1411 }
0x1326   :  { %v1400_v56 = vadd.f32 1e-05, %v1399_v55 }
0x1328   :  { %2170 = vrsqrt.f32 %v1400_v56 }
0x1332   :  { %v2171_v19 = vpop.eup %2170 }
0x1333   :  { %v1402_v57 = vmul.f32 %v2171_v19, %v1304_v43 }
0x1335   :  { %1406 = vperm.xlu0 %2149, %v1402_v57  }
0x1339   :  { %1531 = vrot.lane.b32.xlu0 %v2500_v40, %s2282_s5  ;;  %v1901_v40 = vpack.c.bf16 %v1449_v4, %v1448_v2 }
0x133a   :  { %2151 = vset.pattern.permute.xlu0 %v2259_v37  ;;  %v1450_v37 = vld [vmem:[#allocation5 + $0x320] sm:$0xff] }
0x133b   :  { %1902 = vmatpush3.bf16.msra.mxu1 %v1901_v40  ;;  %v1904_v8 = vpack.c.bf16 %v1451_v7, %v1450_v37 }
0x133c   :  { %1903 = vmatprep.subr.bf16.mxu1 %v2252_v10 }
0x133f   :  { %1905 = vmatpush3.bf16.msra.mxu1 %v1904_v8 }
0x13b4   :  { %v1407_v58 = vpop.permute.xlu0 %1406 }
0x13b5   :  { %v1409_v60 = vmul.f32 %v1407_v58, %v1403_v54 }
0x13b7   :  { %v1414_v61 = vadd.f32 %v1412_v59, %v1409_v60 }
0x13b8   :  { %v1532_v25 = vpop.permute.xlu0 %1531 }
0x13b9   :  { %v1415_v62 = vmax.f32 %v1414_v61, 0.0 }
0x13bb   :  { %v1416_v1 = vmul.f32 %v2586_v11, %v1415_v62 }
0x13bd   :  { %1431 = vrot.lane.b32.xlu1 %v1416_v1, %s2262_s11  ;;  %v1421_v9 = vrot.slane %v1416_v1, 1  ;;  %v1425_v11 = vrot.slane %v1416_v1, 2 }
0x13c1   :  { %1418 = vrot.lane.b32.xlu1 %v1416_v1, %s2256_s10 }
0x13c5   :  { %1434 = vrot.lane.b32.xlu1 %v1421_v9, %s2265_s14 }
0x13c9   :  { %1437 = vrot.lane.b32.xlu1 %v1425_v11, %s2267_s16 }
0x13cd   :  { %1422 = vrot.lane.b32.xlu1 %v1421_v9, %s2269_s18 }
0x13d1   :  { %1426 = vrot.lane.b32.xlu1 %v1425_v11, %s2271_s20 }
0x13d5   :  { %1534 = vrot.lane.b32.xlu1 %v2507_v47, %s2280_s30  ;;  %v1607_v47 = vld [vmem:[#allocation5 + $0x340] ss:$0 sm:$0xff] }
0x142f   :  { %v1432_v13 = vpop.permute.xlu1 %1431 }
0x1433   :  { %v1419_v12 = vpop.permute.xlu1 %1418 }
0x1437   :  { %v1435_v52 = vpop.permute.xlu1 %1434 }
0x1438   :  { %v1440_v10 = vsel %vm566_vm13, %v1432_v13, %v1435_v52 }
0x143b   :  { %v1438_v14 = vpop.permute.xlu1 %1437 }
0x143c   :  { %v1441_v3 = vsel %vm2697_vm0, %v1440_v10, %v1438_v14 }
0x143d   :  { %v1443_v16 = vrot.slane %v1441_v3, 7 }
0x143f   :  { %v1423_v15 = vpop.permute.xlu1 %1422 }
0x1440   :  { %v1429_v17 = vsel %vm566_vm13, %v1419_v12, %v1423_v15  ;;  %vm2701_vm13 = vcmask 523264  }
0x1443   :  { %v1427_v22 = vpop.permute.xlu1 %1426 }
0x1444   :  { %v1430_v6 = vsel %vm2698_vm4, %v1429_v17, %v1427_v22 }
0x1445   :  { %v1445_v18 = vsel %vm87_vm6, %v1430_v6, %v1443_v16 }
0x1446   :  { %1790 = vmatmul.mubr.msk.f32.vlgmr.msra.gmra.mrb[6].mxu1 %vm2699_vm7, %v1445_v18 }
0x1447   :  { %v1535_v28 = vpop.permute.xlu1 %1534 }
0x1519   :  { %v1526_v20 = vpop.f32.mrb[6].mxu1 }
0x151a   :  { %v1527_v21 = vadd.f32 %v1607_v47, %v1526_v20  ;;  %v1791_v23 = vpop.f32.mrb[7].mxu1 }
0x151c   :  { %v1537_v26 = vsel %vm2700_vm9, %v1527_v21, %v1532_v25 }
0x151d   :  { %v1539_v29 = vsel %vm1538_vm2, %v1537_v26, %v1532_v25 }
0x151e   :  { %v1540_v30 = vsel %vm2701_vm13, %v1539_v29, %v1535_v28 }
0x151f   :  { %1542 = vst.msk [vmem:[#allocation7] sm:$0x3] %vm1541_vm15, %v1540_v30 }
0x1520   :  { %2228 = shalt.err (!%p2225_p6)
}
0x1521   :  { %s2229_s11 = scalar_lea.hbm %s2674_s3, 32 }
0x1522   :  { %p2230_p7 = scmp.ne.s32.totalorder %s2674_s3, %s2229_s11  ;;  %p2233_p8 = scmp.lt.u32.totalorder %s2229_s11, %s2674_s3 }
0x1524   :  { %p2235_p9 = pnand %p2233_p8, %p2230_p7 }
0x1526   :  { %2238 = shalt.err (!%p2235_p9)
}
0x1527   :  { %1552 = dma.vmem_to_hbm [thread:$0]  %s1550_s8, 32, %s2674_s3, [#allocation4]  }
0x1528   :  { %2243 = dma.done.wait [#allocation4], 32  }
0x1529   :  { %2244 = vsyncadd [#allocation4], 4294967264 }
0x152a   :  { %1556 = vsyncpa [#allocation3], 1 }
0x152b   :  { %1557 = vsyncpa [#allocation6], 1 }
0x152c   :  { %1558 = vsyncpa [#allocation4], 1 }

</bundles_post_ra>
